<compile_context>
chip_gen: v5e
topology: v5e:2x2
jax: 0.10.0
libtpu: 0.0.40
codegen_flags: <defaults>
</compile_context>

<pallas_src>
import functools

import jax
import jax.numpy as jnp
import numpy as np
from jax import lax
from jax.experimental import pallas as pl
from jax.experimental.pallas import tpu as pltpu


# ----------------------------------------------------------------------------
# Pallas kernel: fused bidirectional LSTM recurrence (input projection already
# hoisted).  Single invocation; time loop lives inside the kernel.
# ----------------------------------------------------------------------------
def _bilstm_kernel(xw_ref, whh_ref,                     # inputs  (VMEM resident)
                   out_f_ref, out_b_ref, hn_ref, cn_ref,  # outputs
                   *, hidden_size, seq_len):
    H = hidden_size
    S = seq_len
    B = xw_ref.shape[1]

    whh = whh_ref[...]          # (2H, 8H) block-diagonal recurrent weight

    def step(s, carry):
        h, c = carry            # each (B, 2H) = [forward | backward]
        # xw_ref[s]: forward-direction pre-activations at time s, backward at
        # time S-1-s, columns [i_f,i_b | f_f,f_b | o_f,o_b | g_f,g_b].
        xw_t = xw_ref[s]                                             # (B, 8H)
        gates = xw_t + jnp.dot(h, whh, preferred_element_type=jnp.float32)

        sig = jax.nn.sigmoid(gates[:, 0:6 * H])    # one wide EUP slab (i,f,o)
        g = jnp.tanh(gates[:, 6 * H:8 * H])        # one wide EUP slab (g)
        i_all = sig[:, 0:2 * H]
        f_all = sig[:, 2 * H:4 * H]
        o_all = sig[:, 4 * H:6 * H]

        c_new = f_all * c + i_all * g              # (B, 2H)
        h_new = o_all * jnp.tanh(c_new)            # (B, 2H)

        out_f_ref[s] = h_new[:, 0:H]               # fwd output at time s
        out_b_ref[S - 1 - s] = h_new[:, H:2 * H]   # bwd output at time S-1-s
        return h_new, c_new

    h0 = jnp.zeros((B, 2 * H), jnp.float32)
    c0 = jnp.zeros((B, 2 * H), jnp.float32)
    h_fin, c_fin = lax.fori_loop(0, S, step, (h0, c0), unroll=True)

    # final states written once, after the last step
    hn_ref[0] = h_fin[:, 0:H]
    hn_ref[1] = h_fin[:, H:2 * H]
    cn_ref[0] = c_fin[:, 0:H]
    cn_ref[1] = c_fin[:, H:2 * H]


# ----------------------------------------------------------------------------
# Encoder wrapper: embedding gather + hoisted input projection (glue) +
# fused-direction Pallas recurrence.
# ----------------------------------------------------------------------------
class EncoderPallas:
    def __init__(self, vocab_size, embed_size, hidden_size, key):
        self.hidden_size = hidden_size
        H, E = hidden_size, embed_size
        k = 1.0 / np.sqrt(hidden_size)
        keys = jax.random.split(key, 9)
        # nn.Embedding default init: N(0, 1)
        self.embedding = jax.random.normal(keys[0], (vocab_size, E), jnp.float32)

        # nn.LSTM default init: U(-1/sqrt(H), 1/sqrt(H)); PyTorch layout,
        # gate rows ordered [i | f | g | o].
        def u(kk, shape):
            return jax.random.uniform(kk, shape, jnp.float32, -k, k)

        self.w_ih_f = u(keys[1], (4 * H, E))
        self.w_hh_f = u(keys[2], (4 * H, H))
        self.b_ih_f = u(keys[3], (4 * H,))
        self.b_hh_f = u(keys[4], (4 * H,))
        self.w_ih_b = u(keys[5], (4 * H, E))
        self.w_hh_b = u(keys[6], (4 * H, H))
        self.b_ih_b = u(keys[7], (4 * H,))
        self.b_hh_b = u(keys[8], (4 * H,))

        self._prepare_fused_weights()

    # one-time weight re-layout (done at construction, not per forward call)
    def _prepare_fused_weights(self):
        H = self.hidden_size

        def gate_split(w):  # PyTorch gate order [i; f; g; o]
            return w[0:H], w[H:2 * H], w[2 * H:3 * H], w[3 * H:4 * H]

        i_f, f_f, g_f, o_f = gate_split(self.w_ih_f)
        i_b, f_b, g_b, o_b = gate_split(self.w_ih_b)
        # per-direction input-projection weights, gate order [i | f | o | g]
        self.wih_proj_f = jnp.concatenate([i_f, f_f, o_f, g_f], axis=0)  # (4H,E)
        self.wih_proj_b = jnp.concatenate([i_b, f_b, o_b, g_b], axis=0)  # (4H,E)

        def bias_ifog(b_ih, b_hh):
            b = b_ih + b_hh
            return jnp.concatenate(
                [b[0:H], b[H:2 * H], b[3 * H:4 * H], b[2 * H:3 * H]])
        self.bias_proj_f = bias_ifog(self.b_ih_f, self.b_hh_f)          # (4H,)
        self.bias_proj_b = bias_ifog(self.b_ih_b, self.b_hh_b)          # (4H,)

        # fused block-diagonal recurrent weight (2H, 8H); column blocks grouped
        # by gate across directions: [i_f,i_b | f_f,f_b | o_f,o_b | g_f,g_b]
        ih_f, fh_f, gh_f, oh_f = gate_split(self.w_hh_f)
        ih_b, fh_b, gh_b, oh_b = gate_split(self.w_hh_b)
        Z = jnp.zeros((H, H), jnp.float32)

        def blk(wf, wb):                    # (2H, 2H) block-diag of (h -> gate)
            top = jnp.concatenate([wf.T, Z], axis=1)   # rows: h_f
            bot = jnp.concatenate([Z, wb.T], axis=1)   # rows: h_b
            return jnp.concatenate([top, bot], axis=0)

        self.whh_fused = jnp.concatenate(
            [blk(ih_f, ih_b), blk(fh_f, fh_b), blk(oh_f, oh_b), blk(gh_f, gh_b)],
            axis=1)                                                    # (2H, 8H)

    def __call__(self, x):
        # x: (batch, seq) int32 token ids
        B, S = x.shape
        H = self.hidden_size
        emb = jnp.take(self.embedding, x, axis=0)                      # (B,S,E)

        # Hoisted input projection for all timesteps of both directions: one
        # big MXU matmul per direction instead of 2*S tiny ones in the loop.
        proj_f = jnp.einsum('bse,ge->bsg', emb, self.wih_proj_f) + self.bias_proj_f
        proj_b = jnp.einsum('bse,ge->bsg', emb, self.wih_proj_b) + self.bias_proj_b
        proj_b = proj_b[:, ::-1, :]        # pre-reverse time for the bwd direction
        # interleave per gate across directions -> columns [i_f,i_b,f_f,f_b,...]
        xw = jnp.stack([proj_f.reshape(B, S, 4, H),
                        proj_b.reshape(B, S, 4, H)], axis=3).reshape(B, S, 8 * H)
        xw_tm = jnp.transpose(xw, (1, 0, 2))                           # (S,B,8H)

        kernel = functools.partial(_bilstm_kernel, hidden_size=H, seq_len=S)
        vmem = pl.BlockSpec(memory_space=pltpu.MemorySpace.VMEM)
        out_f, out_b, h_n, c_n = pl.pallas_call(
            kernel,
            out_shape=(jax.ShapeDtypeStruct((S, B, H), jnp.float32),   # fwd seq
                       jax.ShapeDtypeStruct((S, B, H), jnp.float32),   # bwd seq
                       jax.ShapeDtypeStruct((2, B, H), jnp.float32),   # h_n
                       jax.ShapeDtypeStruct((2, B, H), jnp.float32)),  # c_n
            in_specs=[vmem, vmem],
            out_specs=(vmem, vmem, vmem, vmem),
        )(xw_tm, self.whh_fused)

        output = jnp.concatenate([out_f, out_b], axis=-1)              # (S,B,2H)
        output = jnp.transpose(output, (1, 0, 2))                      # (B,S,2H)
        return output, (h_n, c_n)


# ----------------------------------------------------------------------------
# Pure-JAX reference (lax.scan, original PyTorch weight layout) for checking.
# ----------------------------------------------------------------------------
def _lstm_dir_ref(emb_tm, w_ih, w_hh, b_ih, b_hh, H):
    B = emb_tm.shape[1]
    wih_t, whh_t = w_ih.T, w_hh.T
    b = b_ih + b_hh

    def step(carry, x_t):
        h, c = carry
        g = x_t @ wih_t + h @ whh_t + b
        i = jax.nn.sigmoid(g[:, 0 * H:1 * H])
        f = jax.nn.sigmoid(g[:, 1 * H:2 * H])
        gg = jnp.tanh(g[:, 2 * H:3 * H])
        o = jax.nn.sigmoid(g[:, 3 * H:4 * H])
        c_new = f * c + i * gg
        h_new = o * jnp.tanh(c_new)
        return (h_new, c_new), h_new

    init = (jnp.zeros((B, H), jnp.float32), jnp.zeros((B, H), jnp.float32))
    (h_n, c_n), outs = lax.scan(step, init, emb_tm)
    return outs, h_n, c_n


def encoder_ref(enc: EncoderPallas, x):
    emb = jnp.take(enc.embedding, x, axis=0)
    emb_tm = jnp.transpose(emb, (1, 0, 2))
    H = enc.hidden_size
    of, hf, cf = _lstm_dir_ref(emb_tm, enc.w_ih_f, enc.w_hh_f,
                               enc.b_ih_f, enc.b_hh_f, H)
    obr, hb, cb = _lstm_dir_ref(emb_tm[::-1], enc.w_ih_b, enc.w_hh_b,
                                enc.b_ih_b, enc.b_hh_b, H)
    out = jnp.concatenate([of, obr[::-1]], axis=-1)
    out = jnp.transpose(out, (1, 0, 2))
    return out, (jnp.stack([hf, hb], 0), jnp.stack([cf, cb], 0))


if __name__ == "__main__":
    vocab_size, embed_size, hidden_size = 50, 32, 32
    batch, seq_len = 2, 8

    key = jax.random.PRNGKey(0)
    k_param, k_tok = jax.random.split(key)
    enc = EncoderPallas(vocab_size, embed_size, hidden_size, k_param)

    x = jax.random.randint(k_tok, (batch, seq_len), 0, vocab_size,
                           dtype=jnp.int32)

    output, (h_n, c_n) = jax.jit(enc.__call__)(x)
    jax.block_until_ready((output, h_n, c_n))

    # shape contract (matches PyTorch Encoder.forward)
    assert output.shape == (batch, seq_len, 2 * hidden_size)
    assert h_n.shape == (2, batch, hidden_size)
    assert c_n.shape == (2, batch, hidden_size)

    # numerical spot-check vs pure-JAX reference
    out_r, (h_r, c_r) = encoder_ref(enc, x)
    np.testing.assert_allclose(np.asarray(output), np.asarray(out_r),
                               atol=2e-2, rtol=2e-2)
    np.testing.assert_allclose(np.asarray(h_n), np.asarray(h_r),
                               atol=2e-2, rtol=2e-2)
    np.testing.assert_allclose(np.asarray(c_n), np.asarray(c_r),
                               atol=2e-2, rtol=2e-2)

    print("KERNEL_OK")
</pallas_src>

<mosaic_0001>
module attributes {stable_mosaic.version = 11 : i64} {
  func.func @_bilstm_kernel(%arg0: memref<8x2x256xf32, #tpu.memory_space<vmem>>, %arg1: memref<64x256xf32, #tpu.memory_space<vmem>>, %arg2: memref<8x2x32xf32, #tpu.memory_space<vmem>>, %arg3: memref<8x2x32xf32, #tpu.memory_space<vmem>>, %arg4: memref<2x2x32xf32, #tpu.memory_space<vmem>>, %arg5: memref<2x2x32xf32, #tpu.memory_space<vmem>>) attributes {dimension_semantics = [], scalar_prefetch = 0 : i64, scratch_operands = 0 : i64, tpu.core_type = #tpu.core_type<tc>} {
    %c0 = arith.constant 0 : index
    %c0_0 = arith.constant 0 : index
    %0 = vector.load %arg1[%c0, %c0_0] : memref<64x256xf32, #tpu.memory_space<vmem>>, vector<64x256xf32>
    %cst = arith.constant 0.000000e+00 : f32
    %1 = vector.broadcast %cst : f32 to vector<2x64xf32>
    %cst_1 = arith.constant 0.000000e+00 : f32
    %2 = vector.broadcast %cst_1 : f32 to vector<2x64xf32>
    %c0_i32 = arith.constant 0 : i32
    %3 = arith.index_cast %c0_i32 : i32 to index
    %c0_2 = arith.constant 0 : index
    %c0_3 = arith.constant 0 : index
    %4 = vector.load %arg0[%3, %c0_2, %c0_3] : memref<8x2x256xf32, #tpu.memory_space<vmem>>, vector<1x2x256xf32>
    %5 = vector.shape_cast %4 : vector<1x2x256xf32> to vector<2x256xf32>
    %cst_4 = arith.constant dense<0.000000e+00> : vector<2x256xf32>
    %6 = tpu.matmul %1, %0, %cst_4 {dimension_numbers = #tpu.dot_dimension_numbers<[1], [0], [0], [1], [0, 0, 1, 1], [], []>} : vector<2x64xf32>, vector<64x256xf32>, vector<2x256xf32> -> vector<2x256xf32>
    %7 = arith.addf %5, %6 : vector<2x256xf32>
    %8 = vector.extract_strided_slice %7 {offsets = [0, 0], sizes = [2, 192], strides = [1, 1]} : vector<2x256xf32> to vector<2x192xf32>
    %9 = arith.negf %8 : vector<2x192xf32>
    %10 = math.exp %9 : vector<2x192xf32>
    %cst_5 = arith.constant 1.000000e+00 : f32
    %11 = vector.broadcast %cst_5 : f32 to vector<2x192xf32>
    %12 = arith.addf %11, %10 : vector<2x192xf32>
    %13 = arith.divf %11, %12 : vector<2x192xf32>
    %14 = vector.extract_strided_slice %7 {offsets = [0, 192], sizes = [2, 64], strides = [1, 1]} : vector<2x256xf32> to vector<2x64xf32>
    %15 = math.tanh %14 : vector<2x64xf32>
    %16 = vector.extract_strided_slice %13 {offsets = [0, 0], sizes = [2, 64], strides = [1, 1]} : vector<2x192xf32> to vector<2x64xf32>
    %17 = vector.extract_strided_slice %13 {offsets = [0, 64], sizes = [2, 64], strides = [1, 1]} : vector<2x192xf32> to vector<2x64xf32>
    %18 = vector.extract_strided_slice %13 {offsets = [0, 128], sizes = [2, 64], strides = [1, 1]} : vector<2x192xf32> to vector<2x64xf32>
    %19 = arith.mulf %17, %2 : vector<2x64xf32>
    %20 = arith.mulf %16, %15 : vector<2x64xf32>
    %21 = arith.addf %19, %20 : vector<2x64xf32>
    %22 = math.tanh %21 : vector<2x64xf32>
    %23 = arith.mulf %18, %22 : vector<2x64xf32>
    %24 = vector.extract_strided_slice %23 {offsets = [0, 0], sizes = [2, 32], strides = [1, 1]} : vector<2x64xf32> to vector<2x32xf32>
    %25 = arith.index_cast %c0_i32 : i32 to index
    %c0_6 = arith.constant 0 : index
    %c0_7 = arith.constant 0 : index
    %26 = vector.load %arg2[%25, %c0_6, %c0_7] : memref<8x2x32xf32, #tpu.memory_space<vmem>>, vector<1x2x32xf32>
    %27 = vector.shape_cast %26 : vector<1x2x32xf32> to vector<2x32xf32>
    %28 = vector.shape_cast %24 : vector<2x32xf32> to vector<1x2x32xf32>
    tpu.vector_store %arg2[%25, %c0_6, %c0_7], %28 {strides = array<i32>} : memref<8x2x32xf32, #tpu.memory_space<vmem>>, vector<1x2x32xf32>,
    %29 = vector.extract_strided_slice %23 {offsets = [0, 32], sizes = [2, 32], strides = [1, 1]} : vector<2x64xf32> to vector<2x32xf32>
    %c7_i32 = arith.constant 7 : i32
    %30 = arith.subi %c7_i32, %c0_i32 : i32
    %31 = arith.index_cast %30 : i32 to index
    %c0_8 = arith.constant 0 : index
    %c0_9 = arith.constant 0 : index
    %32 = vector.load %arg3[%31, %c0_8, %c0_9] : memref<8x2x32xf32, #tpu.memory_space<vmem>>, vector<1x2x32xf32>
    %33 = vector.shape_cast %32 : vector<1x2x32xf32> to vector<2x32xf32>
    %34 = vector.shape_cast %29 : vector<2x32xf32> to vector<1x2x32xf32>
    tpu.vector_store %arg3[%31, %c0_8, %c0_9], %34 {strides = array<i32>} : memref<8x2x32xf32, #tpu.memory_space<vmem>>, vector<1x2x32xf32>,
    %c1_i32 = arith.constant 1 : i32
    %35 = arith.index_cast %c1_i32 : i32 to index
    %c0_10 = arith.constant 0 : index
    %c0_11 = arith.constant 0 : index
    %36 = vector.load %arg0[%35, %c0_10, %c0_11] : memref<8x2x256xf32, #tpu.memory_space<vmem>>, vector<1x2x256xf32>
    %37 = vector.shape_cast %36 : vector<1x2x256xf32> to vector<2x256xf32>
    %cst_12 = arith.constant dense<0.000000e+00> : vector<2x256xf32>
    %38 = tpu.matmul %23, %0, %cst_12 {dimension_numbers = #tpu.dot_dimension_numbers<[1], [0], [0], [1], [0, 0, 1, 1], [], []>} : vector<2x64xf32>, vector<64x256xf32>, vector<2x256xf32> -> vector<2x256xf32>
    %39 = arith.addf %37, %38 : vector<2x256xf32>
    %40 = vector.extract_strided_slice %39 {offsets = [0, 0], sizes = [2, 192], strides = [1, 1]} : vector<2x256xf32> to vector<2x192xf32>
    %41 = arith.negf %40 : vector<2x192xf32>
    %42 = math.exp %41 : vector<2x192xf32>
    %cst_13 = arith.constant 1.000000e+00 : f32
    %43 = vector.broadcast %cst_13 : f32 to vector<2x192xf32>
    %44 = arith.addf %43, %42 : vector<2x192xf32>
    %45 = arith.divf %43, %44 : vector<2x192xf32>
    %46 = vector.extract_strided_slice %39 {offsets = [0, 192], sizes = [2, 64], strides = [1, 1]} : vector<2x256xf32> to vector<2x64xf32>
    %47 = math.tanh %46 : vector<2x64xf32>
    %48 = vector.extract_strided_slice %45 {offsets = [0, 0], sizes = [2, 64], strides = [1, 1]} : vector<2x192xf32> to vector<2x64xf32>
    %49 = vector.extract_strided_slice %45 {offsets = [0, 64], sizes = [2, 64], strides = [1, 1]} : vector<2x192xf32> to vector<2x64xf32>
    %50 = vector.extract_strided_slice %45 {offsets = [0, 128], sizes = [2, 64], strides = [1, 1]} : vector<2x192xf32> to vector<2x64xf32>
    %51 = arith.mulf %49, %21 : vector<2x64xf32>
    %52 = arith.mulf %48, %47 : vector<2x64xf32>
    %53 = arith.addf %51, %52 : vector<2x64xf32>
    %54 = math.tanh %53 : vector<2x64xf32>
    %55 = arith.mulf %50, %54 : vector<2x64xf32>
    %56 = vector.extract_strided_slice %55 {offsets = [0, 0], sizes = [2, 32], strides = [1, 1]} : vector<2x64xf32> to vector<2x32xf32>
    %57 = arith.index_cast %c1_i32 : i32 to index
    %c0_14 = arith.constant 0 : index
    %c0_15 = arith.constant 0 : index
    %58 = vector.load %arg2[%57, %c0_14, %c0_15] : memref<8x2x32xf32, #tpu.memory_space<vmem>>, vector<1x2x32xf32>
    %59 = vector.shape_cast %58 : vector<1x2x32xf32> to vector<2x32xf32>
    %60 = vector.shape_cast %56 : vector<2x32xf32> to vector<1x2x32xf32>
    tpu.vector_store %arg2[%57, %c0_14, %c0_15], %60 {strides = array<i32>} : memref<8x2x32xf32, #tpu.memory_space<vmem>>, vector<1x2x32xf32>,
    %61 = vector.extract_strided_slice %55 {offsets = [0, 32], sizes = [2, 32], strides = [1, 1]} : vector<2x64xf32> to vector<2x32xf32>
    %c7_i32_16 = arith.constant 7 : i32
    %62 = arith.subi %c7_i32_16, %c1_i32 : i32
    %63 = arith.index_cast %62 : i32 to index
    %c0_17 = arith.constant 0 : index
    %c0_18 = arith.constant 0 : index
    %64 = vector.load %arg3[%63, %c0_17, %c0_18] : memref<8x2x32xf32, #tpu.memory_space<vmem>>, vector<1x2x32xf32>
    %65 = vector.shape_cast %64 : vector<1x2x32xf32> to vector<2x32xf32>
    %66 = vector.shape_cast %61 : vector<2x32xf32> to vector<1x2x32xf32>
    tpu.vector_store %arg3[%63, %c0_17, %c0_18], %66 {strides = array<i32>} : memref<8x2x32xf32, #tpu.memory_space<vmem>>, vector<1x2x32xf32>,
    %c2_i32 = arith.constant 2 : i32
    %67 = arith.index_cast %c2_i32 : i32 to index
    %c0_19 = arith.constant 0 : index
    %c0_20 = arith.constant 0 : index
    %68 = vector.load %arg0[%67, %c0_19, %c0_20] : memref<8x2x256xf32, #tpu.memory_space<vmem>>, vector<1x2x256xf32>
    %69 = vector.shape_cast %68 : vector<1x2x256xf32> to vector<2x256xf32>
    %cst_21 = arith.constant dense<0.000000e+00> : vector<2x256xf32>
    %70 = tpu.matmul %55, %0, %cst_21 {dimension_numbers = #tpu.dot_dimension_numbers<[1], [0], [0], [1], [0, 0, 1, 1], [], []>} : vector<2x64xf32>, vector<64x256xf32>, vector<2x256xf32> -> vector<2x256xf32>
    %71 = arith.addf %69, %70 : vector<2x256xf32>
    %72 = vector.extract_strided_slice %71 {offsets = [0, 0], sizes = [2, 192], strides = [1, 1]} : vector<2x256xf32> to vector<2x192xf32>
    %73 = arith.negf %72 : vector<2x192xf32>
    %74 = math.exp %73 : vector<2x192xf32>
    %cst_22 = arith.constant 1.000000e+00 : f32
    %75 = vector.broadcast %cst_22 : f32 to vector<2x192xf32>
    %76 = arith.addf %75, %74 : vector<2x192xf32>
    %77 = arith.divf %75, %76 : vector<2x192xf32>
    %78 = vector.extract_strided_slice %71 {offsets = [0, 192], sizes = [2, 64], strides = [1, 1]} : vector<2x256xf32> to vector<2x64xf32>
    %79 = math.tanh %78 : vector<2x64xf32>
    %80 = vector.extract_strided_slice %77 {offsets = [0, 0], sizes = [2, 64], strides = [1, 1]} : vector<2x192xf32> to vector<2x64xf32>
    %81 = vector.extract_strided_slice %77 {offsets = [0, 64], sizes = [2, 64], strides = [1, 1]} : vector<2x192xf32> to vector<2x64xf32>
    %82 = vector.extract_strided_slice %77 {offsets = [0, 128], sizes = [2, 64], strides = [1, 1]} : vector<2x192xf32> to vector<2x64xf32>
    %83 = arith.mulf %81, %53 : vector<2x64xf32>
    %84 = arith.mulf %80, %79 : vector<2x64xf32>
    %85 = arith.addf %83, %84 : vector<2x64xf32>
    %86 = math.tanh %85 : vector<2x64xf32>
    %87 = arith.mulf %82, %86 : vector<2x64xf32>
    %88 = vector.extract_strided_slice %87 {offsets = [0, 0], sizes = [2, 32], strides = [1, 1]} : vector<2x64xf32> to vector<2x32xf32>
    %89 = arith.index_cast %c2_i32 : i32 to index
    %c0_23 = arith.constant 0 : index
    %c0_24 = arith.constant 0 : index
    %90 = vector.load %arg2[%89, %c0_23, %c0_24] : memref<8x2x32xf32, #tpu.memory_space<vmem>>, vector<1x2x32xf32>
    %91 = vector.shape_cast %90 : vector<1x2x32xf32> to vector<2x32xf32>
    %92 = vector.shape_cast %88 : vector<2x32xf32> to vector<1x2x32xf32>
    tpu.vector_store %arg2[%89, %c0_23, %c0_24], %92 {strides = array<i32>} : memref<8x2x32xf32, #tpu.memory_space<vmem>>, vector<1x2x32xf32>,
    %93 = vector.extract_strided_slice %87 {offsets = [0, 32], sizes = [2, 32], strides = [1, 1]} : vector<2x64xf32> to vector<2x32xf32>
    %c7_i32_25 = arith.constant 7 : i32
    %94 = arith.subi %c7_i32_25, %c2_i32 : i32
    %95 = arith.index_cast %94 : i32 to index
    %c0_26 = arith.constant 0 : index
    %c0_27 = arith.constant 0 : index
    %96 = vector.load %arg3[%95, %c0_26, %c0_27] : memref<8x2x32xf32, #tpu.memory_space<vmem>>, vector<1x2x32xf32>
    %97 = vector.shape_cast %96 : vector<1x2x32xf32> to vector<2x32xf32>
    %98 = vector.shape_cast %93 : vector<2x32xf32> to vector<1x2x32xf32>
    tpu.vector_store %arg3[%95, %c0_26, %c0_27], %98 {strides = array<i32>} : memref<8x2x32xf32, #tpu.memory_space<vmem>>, vector<1x2x32xf32>,
    %c3_i32 = arith.constant 3 : i32
    %99 = arith.index_cast %c3_i32 : i32 to index
    %c0_28 = arith.constant 0 : index
    %c0_29 = arith.constant 0 : index
    %100 = vector.load %arg0[%99, %c0_28, %c0_29] : memref<8x2x256xf32, #tpu.memory_space<vmem>>, vector<1x2x256xf32>
    %101 = vector.shape_cast %100 : vector<1x2x256xf32> to vector<2x256xf32>
    %cst_30 = arith.constant dense<0.000000e+00> : vector<2x256xf32>
    %102 = tpu.matmul %87, %0, %cst_30 {dimension_numbers = #tpu.dot_dimension_numbers<[1], [0], [0], [1], [0, 0, 1, 1], [], []>} : vector<2x64xf32>, vector<64x256xf32>, vector<2x256xf32> -> vector<2x256xf32>
    %103 = arith.addf %101, %102 : vector<2x256xf32>
    %104 = vector.extract_strided_slice %103 {offsets = [0, 0], sizes = [2, 192], strides = [1, 1]} : vector<2x256xf32> to vector<2x192xf32>
    %105 = arith.negf %104 : vector<2x192xf32>
    %106 = math.exp %105 : vector<2x192xf32>
    %cst_31 = arith.constant 1.000000e+00 : f32
    %107 = vector.broadcast %cst_31 : f32 to vector<2x192xf32>
    %108 = arith.addf %107, %106 : vector<2x192xf32>
    %109 = arith.divf %107, %108 : vector<2x192xf32>
    %110 = vector.extract_strided_slice %103 {offsets = [0, 192], sizes = [2, 64], strides = [1, 1]} : vector<2x256xf32> to vector<2x64xf32>
    %111 = math.tanh %110 : vector<2x64xf32>
    %112 = vector.extract_strided_slice %109 {offsets = [0, 0], sizes = [2, 64], strides = [1, 1]} : vector<2x192xf32> to vector<2x64xf32>
    %113 = vector.extract_strided_slice %109 {offsets = [0, 64], sizes = [2, 64], strides = [1, 1]} : vector<2x192xf32> to vector<2x64xf32>
    %114 = vector.extract_strided_slice %109 {offsets = [0, 128], sizes = [2, 64], strides = [1, 1]} : vector<2x192xf32> to vector<2x64xf32>
    %115 = arith.mulf %113, %85 : vector<2x64xf32>
    %116 = arith.mulf %112, %111 : vector<2x64xf32>
    %117 = arith.addf %115, %116 : vector<2x64xf32>
    %118 = math.tanh %117 : vector<2x64xf32>
    %119 = arith.mulf %114, %118 : vector<2x64xf32>
    %120 = vector.extract_strided_slice %119 {offsets = [0, 0], sizes = [2, 32], strides = [1, 1]} : vector<2x64xf32> to vector<2x32xf32>
    %121 = arith.index_cast %c3_i32 : i32 to index
    %c0_32 = arith.constant 0 : index
    %c0_33 = arith.constant 0 : index
    %122 = vector.load %arg2[%121, %c0_32, %c0_33] : memref<8x2x32xf32, #tpu.memory_space<vmem>>, vector<1x2x32xf32>
    %123 = vector.shape_cast %122 : vector<1x2x32xf32> to vector<2x32xf32>
    %124 = vector.shape_cast %120 : vector<2x32xf32> to vector<1x2x32xf32>
    tpu.vector_store %arg2[%121, %c0_32, %c0_33], %124 {strides = array<i32>} : memref<8x2x32xf32, #tpu.memory_space<vmem>>, vector<1x2x32xf32>,
    %125 = vector.extract_strided_slice %119 {offsets = [0, 32], sizes = [2, 32], strides = [1, 1]} : vector<2x64xf32> to vector<2x32xf32>
    %c7_i32_34 = arith.constant 7 : i32
    %126 = arith.subi %c7_i32_34, %c3_i32 : i32
    %127 = arith.index_cast %126 : i32 to index
    %c0_35 = arith.constant 0 : index
    %c0_36 = arith.constant 0 : index
    %128 = vector.load %arg3[%127, %c0_35, %c0_36] : memref<8x2x32xf32, #tpu.memory_space<vmem>>, vector<1x2x32xf32>
    %129 = vector.shape_cast %128 : vector<1x2x32xf32> to vector<2x32xf32>
    %130 = vector.shape_cast %125 : vector<2x32xf32> to vector<1x2x32xf32>
    tpu.vector_store %arg3[%127, %c0_35, %c0_36], %130 {strides = array<i32>} : memref<8x2x32xf32, #tpu.memory_space<vmem>>, vector<1x2x32xf32>,
    %c4_i32 = arith.constant 4 : i32
    %131 = arith.index_cast %c4_i32 : i32 to index
    %c0_37 = arith.constant 0 : index
    %c0_38 = arith.constant 0 : index
    %132 = vector.load %arg0[%131, %c0_37, %c0_38] : memref<8x2x256xf32, #tpu.memory_space<vmem>>, vector<1x2x256xf32>
    %133 = vector.shape_cast %132 : vector<1x2x256xf32> to vector<2x256xf32>
    %cst_39 = arith.constant dense<0.000000e+00> : vector<2x256xf32>
    %134 = tpu.matmul %119, %0, %cst_39 {dimension_numbers = #tpu.dot_dimension_numbers<[1], [0], [0], [1], [0, 0, 1, 1], [], []>} : vector<2x64xf32>, vector<64x256xf32>, vector<2x256xf32> -> vector<2x256xf32>
    %135 = arith.addf %133, %134 : vector<2x256xf32>
    %136 = vector.extract_strided_slice %135 {offsets = [0, 0], sizes = [2, 192], strides = [1, 1]} : vector<2x256xf32> to vector<2x192xf32>
    %137 = arith.negf %136 : vector<2x192xf32>
    %138 = math.exp %137 : vector<2x192xf32>
    %cst_40 = arith.constant 1.000000e+00 : f32
    %139 = vector.broadcast %cst_40 : f32 to vector<2x192xf32>
    %140 = arith.addf %139, %138 : vector<2x192xf32>
    %141 = arith.divf %139, %140 : vector<2x192xf32>
    %142 = vector.extract_strided_slice %135 {offsets = [0, 192], sizes = [2, 64], strides = [1, 1]} : vector<2x256xf32> to vector<2x64xf32>
    %143 = math.tanh %142 : vector<2x64xf32>
    %144 = vector.extract_strided_slice %141 {offsets = [0, 0], sizes = [2, 64], strides = [1, 1]} : vector<2x192xf32> to vector<2x64xf32>
    %145 = vector.extract_strided_slice %141 {offsets = [0, 64], sizes = [2, 64], strides = [1, 1]} : vector<2x192xf32> to vector<2x64xf32>
    %146 = vector.extract_strided_slice %141 {offsets = [0, 128], sizes = [2, 64], strides = [1, 1]} : vector<2x192xf32> to vector<2x64xf32>
    %147 = arith.mulf %145, %117 : vector<2x64xf32>
    %148 = arith.mulf %144, %143 : vector<2x64xf32>
    %149 = arith.addf %147, %148 : vector<2x64xf32>
    %150 = math.tanh %149 : vector<2x64xf32>
    %151 = arith.mulf %146, %150 : vector<2x64xf32>
    %152 = vector.extract_strided_slice %151 {offsets = [0, 0], sizes = [2, 32], strides = [1, 1]} : vector<2x64xf32> to vector<2x32xf32>
    %153 = arith.index_cast %c4_i32 : i32 to index
    %c0_41 = arith.constant 0 : index
    %c0_42 = arith.constant 0 : index
    %154 = vector.load %arg2[%153, %c0_41, %c0_42] : memref<8x2x32xf32, #tpu.memory_space<vmem>>, vector<1x2x32xf32>
    %155 = vector.shape_cast %154 : vector<1x2x32xf32> to vector<2x32xf32>
    %156 = vector.shape_cast %152 : vector<2x32xf32> to vector<1x2x32xf32>
    tpu.vector_store %arg2[%153, %c0_41, %c0_42], %156 {strides = array<i32>} : memref<8x2x32xf32, #tpu.memory_space<vmem>>, vector<1x2x32xf32>,
    %157 = vector.extract_strided_slice %151 {offsets = [0, 32], sizes = [2, 32], strides = [1, 1]} : vector<2x64xf32> to vector<2x32xf32>
    %c7_i32_43 = arith.constant 7 : i32
    %158 = arith.subi %c7_i32_43, %c4_i32 : i32
    %159 = arith.index_cast %158 : i32 to index
    %c0_44 = arith.constant 0 : index
    %c0_45 = arith.constant 0 : index
    %160 = vector.load %arg3[%159, %c0_44, %c0_45] : memref<8x2x32xf32, #tpu.memory_space<vmem>>, vector<1x2x32xf32>
    %161 = vector.shape_cast %160 : vector<1x2x32xf32> to vector<2x32xf32>
    %162 = vector.shape_cast %157 : vector<2x32xf32> to vector<1x2x32xf32>
    tpu.vector_store %arg3[%159, %c0_44, %c0_45], %162 {strides = array<i32>} : memref<8x2x32xf32, #tpu.memory_space<vmem>>, vector<1x2x32xf32>,
    %c5_i32 = arith.constant 5 : i32
    %163 = arith.index_cast %c5_i32 : i32 to index
    %c0_46 = arith.constant 0 : index
    %c0_47 = arith.constant 0 : index
    %164 = vector.load %arg0[%163, %c0_46, %c0_47] : memref<8x2x256xf32, #tpu.memory_space<vmem>>, vector<1x2x256xf32>
    %165 = vector.shape_cast %164 : vector<1x2x256xf32> to vector<2x256xf32>
    %cst_48 = arith.constant dense<0.000000e+00> : vector<2x256xf32>
    %166 = tpu.matmul %151, %0, %cst_48 {dimension_numbers = #tpu.dot_dimension_numbers<[1], [0], [0], [1], [0, 0, 1, 1], [], []>} : vector<2x64xf32>, vector<64x256xf32>, vector<2x256xf32> -> vector<2x256xf32>
    %167 = arith.addf %165, %166 : vector<2x256xf32>
    %168 = vector.extract_strided_slice %167 {offsets = [0, 0], sizes = [2, 192], strides = [1, 1]} : vector<2x256xf32> to vector<2x192xf32>
    %169 = arith.negf %168 : vector<2x192xf32>
    %170 = math.exp %169 : vector<2x192xf32>
    %cst_49 = arith.constant 1.000000e+00 : f32
    %171 = vector.broadcast %cst_49 : f32 to vector<2x192xf32>
    %172 = arith.addf %171, %170 : vector<2x192xf32>
    %173 = arith.divf %171, %172 : vector<2x192xf32>
    %174 = vector.extract_strided_slice %167 {offsets = [0, 192], sizes = [2, 64], strides = [1, 1]} : vector<2x256xf32> to vector<2x64xf32>
    %175 = math.tanh %174 : vector<2x64xf32>
    %176 = vector.extract_strided_slice %173 {offsets = [0, 0], sizes = [2, 64], strides = [1, 1]} : vector<2x192xf32> to vector<2x64xf32>
    %177 = vector.extract_strided_slice %173 {offsets = [0, 64], sizes = [2, 64], strides = [1, 1]} : vector<2x192xf32> to vector<2x64xf32>
    %178 = vector.extract_strided_slice %173 {offsets = [0, 128], sizes = [2, 64], strides = [1, 1]} : vector<2x192xf32> to vector<2x64xf32>
    %179 = arith.mulf %177, %149 : vector<2x64xf32>
    %180 = arith.mulf %176, %175 : vector<2x64xf32>
    %181 = arith.addf %179, %180 : vector<2x64xf32>
    %182 = math.tanh %181 : vector<2x64xf32>
    %183 = arith.mulf %178, %182 : vector<2x64xf32>
    %184 = vector.extract_strided_slice %183 {offsets = [0, 0], sizes = [2, 32], strides = [1, 1]} : vector<2x64xf32> to vector<2x32xf32>
    %185 = arith.index_cast %c5_i32 : i32 to index
    %c0_50 = arith.constant 0 : index
    %c0_51 = arith.constant 0 : index
    %186 = vector.load %arg2[%185, %c0_50, %c0_51] : memref<8x2x32xf32, #tpu.memory_space<vmem>>, vector<1x2x32xf32>
    %187 = vector.shape_cast %186 : vector<1x2x32xf32> to vector<2x32xf32>
    %188 = vector.shape_cast %184 : vector<2x32xf32> to vector<1x2x32xf32>
    tpu.vector_store %arg2[%185, %c0_50, %c0_51], %188 {strides = array<i32>} : memref<8x2x32xf32, #tpu.memory_space<vmem>>, vector<1x2x32xf32>,
    %189 = vector.extract_strided_slice %183 {offsets = [0, 32], sizes = [2, 32], strides = [1, 1]} : vector<2x64xf32> to vector<2x32xf32>
    %c7_i32_52 = arith.constant 7 : i32
    %190 = arith.subi %c7_i32_52, %c5_i32 : i32
    %191 = arith.index_cast %190 : i32 to index
    %c0_53 = arith.constant 0 : index
    %c0_54 = arith.constant 0 : index
    %192 = vector.load %arg3[%191, %c0_53, %c0_54] : memref<8x2x32xf32, #tpu.memory_space<vmem>>, vector<1x2x32xf32>
    %193 = vector.shape_cast %192 : vector<1x2x32xf32> to vector<2x32xf32>
    %194 = vector.shape_cast %189 : vector<2x32xf32> to vector<1x2x32xf32>
    tpu.vector_store %arg3[%191, %c0_53, %c0_54], %194 {strides = array<i32>} : memref<8x2x32xf32, #tpu.memory_space<vmem>>, vector<1x2x32xf32>,
    %c6_i32 = arith.constant 6 : i32
    %195 = arith.index_cast %c6_i32 : i32 to index
    %c0_55 = arith.constant 0 : index
    %c0_56 = arith.constant 0 : index
    %196 = vector.load %arg0[%195, %c0_55, %c0_56] : memref<8x2x256xf32, #tpu.memory_space<vmem>>, vector<1x2x256xf32>
    %197 = vector.shape_cast %196 : vector<1x2x256xf32> to vector<2x256xf32>
    %cst_57 = arith.constant dense<0.000000e+00> : vector<2x256xf32>
    %198 = tpu.matmul %183, %0, %cst_57 {dimension_numbers = #tpu.dot_dimension_numbers<[1], [0], [0], [1], [0, 0, 1, 1], [], []>} : vector<2x64xf32>, vector<64x256xf32>, vector<2x256xf32> -> vector<2x256xf32>
    %199 = arith.addf %197, %198 : vector<2x256xf32>
    %200 = vector.extract_strided_slice %199 {offsets = [0, 0], sizes = [2, 192], strides = [1, 1]} : vector<2x256xf32> to vector<2x192xf32>
    %201 = arith.negf %200 : vector<2x192xf32>
    %202 = math.exp %201 : vector<2x192xf32>
    %cst_58 = arith.constant 1.000000e+00 : f32
    %203 = vector.broadcast %cst_58 : f32 to vector<2x192xf32>
    %204 = arith.addf %203, %202 : vector<2x192xf32>
    %205 = arith.divf %203, %204 : vector<2x192xf32>
    %206 = vector.extract_strided_slice %199 {offsets = [0, 192], sizes = [2, 64], strides = [1, 1]} : vector<2x256xf32> to vector<2x64xf32>
    %207 = math.tanh %206 : vector<2x64xf32>
    %208 = vector.extract_strided_slice %205 {offsets = [0, 0], sizes = [2, 64], strides = [1, 1]} : vector<2x192xf32> to vector<2x64xf32>
    %209 = vector.extract_strided_slice %205 {offsets = [0, 64], sizes = [2, 64], strides = [1, 1]} : vector<2x192xf32> to vector<2x64xf32>
    %210 = vector.extract_strided_slice %205 {offsets = [0, 128], sizes = [2, 64], strides = [1, 1]} : vector<2x192xf32> to vector<2x64xf32>
    %211 = arith.mulf %209, %181 : vector<2x64xf32>
    %212 = arith.mulf %208, %207 : vector<2x64xf32>
    %213 = arith.addf %211, %212 : vector<2x64xf32>
    %214 = math.tanh %213 : vector<2x64xf32>
    %215 = arith.mulf %210, %214 : vector<2x64xf32>
    %216 = vector.extract_strided_slice %215 {offsets = [0, 0], sizes = [2, 32], strides = [1, 1]} : vector<2x64xf32> to vector<2x32xf32>
    %217 = arith.index_cast %c6_i32 : i32 to index
    %c0_59 = arith.constant 0 : index
    %c0_60 = arith.constant 0 : index
    %218 = vector.load %arg2[%217, %c0_59, %c0_60] : memref<8x2x32xf32, #tpu.memory_space<vmem>>, vector<1x2x32xf32>
    %219 = vector.shape_cast %218 : vector<1x2x32xf32> to vector<2x32xf32>
    %220 = vector.shape_cast %216 : vector<2x32xf32> to vector<1x2x32xf32>
    tpu.vector_store %arg2[%217, %c0_59, %c0_60], %220 {strides = array<i32>} : memref<8x2x32xf32, #tpu.memory_space<vmem>>, vector<1x2x32xf32>,
    %221 = vector.extract_strided_slice %215 {offsets = [0, 32], sizes = [2, 32], strides = [1, 1]} : vector<2x64xf32> to vector<2x32xf32>
    %c7_i32_61 = arith.constant 7 : i32
    %222 = arith.subi %c7_i32_61, %c6_i32 : i32
    %223 = arith.index_cast %222 : i32 to index
    %c0_62 = arith.constant 0 : index
    %c0_63 = arith.constant 0 : index
    %224 = vector.load %arg3[%223, %c0_62, %c0_63] : memref<8x2x32xf32, #tpu.memory_space<vmem>>, vector<1x2x32xf32>
    %225 = vector.shape_cast %224 : vector<1x2x32xf32> to vector<2x32xf32>
    %226 = vector.shape_cast %221 : vector<2x32xf32> to vector<1x2x32xf32>
    tpu.vector_store %arg3[%223, %c0_62, %c0_63], %226 {strides = array<i32>} : memref<8x2x32xf32, #tpu.memory_space<vmem>>, vector<1x2x32xf32>,
    %c7_i32_64 = arith.constant 7 : i32
    %227 = arith.index_cast %c7_i32_64 : i32 to index
    %c0_65 = arith.constant 0 : index
    %c0_66 = arith.constant 0 : index
    %228 = vector.load %arg0[%227, %c0_65, %c0_66] : memref<8x2x256xf32, #tpu.memory_space<vmem>>, vector<1x2x256xf32>
    %229 = vector.shape_cast %228 : vector<1x2x256xf32> to vector<2x256xf32>
    %cst_67 = arith.constant dense<0.000000e+00> : vector<2x256xf32>
    %230 = tpu.matmul %215, %0, %cst_67 {dimension_numbers = #tpu.dot_dimension_numbers<[1], [0], [0], [1], [0, 0, 1, 1], [], []>} : vector<2x64xf32>, vector<64x256xf32>, vector<2x256xf32> -> vector<2x256xf32>
    %231 = arith.addf %229, %230 : vector<2x256xf32>
    %232 = vector.extract_strided_slice %231 {offsets = [0, 0], sizes = [2, 192], strides = [1, 1]} : vector<2x256xf32> to vector<2x192xf32>
    %233 = arith.negf %232 : vector<2x192xf32>
    %234 = math.exp %233 : vector<2x192xf32>
    %cst_68 = arith.constant 1.000000e+00 : f32
    %235 = vector.broadcast %cst_68 : f32 to vector<2x192xf32>
    %236 = arith.addf %235, %234 : vector<2x192xf32>
    %237 = arith.divf %235, %236 : vector<2x192xf32>
    %238 = vector.extract_strided_slice %231 {offsets = [0, 192], sizes = [2, 64], strides = [1, 1]} : vector<2x256xf32> to vector<2x64xf32>
    %239 = math.tanh %238 : vector<2x64xf32>
    %240 = vector.extract_strided_slice %237 {offsets = [0, 0], sizes = [2, 64], strides = [1, 1]} : vector<2x192xf32> to vector<2x64xf32>
    %241 = vector.extract_strided_slice %237 {offsets = [0, 64], sizes = [2, 64], strides = [1, 1]} : vector<2x192xf32> to vector<2x64xf32>
    %242 = vector.extract_strided_slice %237 {offsets = [0, 128], sizes = [2, 64], strides = [1, 1]} : vector<2x192xf32> to vector<2x64xf32>
    %243 = arith.mulf %241, %213 : vector<2x64xf32>
    %244 = arith.mulf %240, %239 : vector<2x64xf32>
    %245 = arith.addf %243, %244 : vector<2x64xf32>
    %246 = math.tanh %245 : vector<2x64xf32>
    %247 = arith.mulf %242, %246 : vector<2x64xf32>
    %248 = vector.extract_strided_slice %247 {offsets = [0, 0], sizes = [2, 32], strides = [1, 1]} : vector<2x64xf32> to vector<2x32xf32>
    %249 = arith.index_cast %c7_i32_64 : i32 to index
    %c0_69 = arith.constant 0 : index
    %c0_70 = arith.constant 0 : index
    %250 = vector.load %arg2[%249, %c0_69, %c0_70] : memref<8x2x32xf32, #tpu.memory_space<vmem>>, vector<1x2x32xf32>
    %251 = vector.shape_cast %250 : vector<1x2x32xf32> to vector<2x32xf32>
    %252 = vector.shape_cast %248 : vector<2x32xf32> to vector<1x2x32xf32>
    tpu.vector_store %arg2[%249, %c0_69, %c0_70], %252 {strides = array<i32>} : memref<8x2x32xf32, #tpu.memory_space<vmem>>, vector<1x2x32xf32>,
    %253 = vector.extract_strided_slice %247 {offsets = [0, 32], sizes = [2, 32], strides = [1, 1]} : vector<2x64xf32> to vector<2x32xf32>
    %c7_i32_71 = arith.constant 7 : i32
    %254 = arith.subi %c7_i32_71, %c7_i32_64 : i32
    %255 = arith.index_cast %254 : i32 to index
    %c0_72 = arith.constant 0 : index
    %c0_73 = arith.constant 0 : index
    %256 = vector.load %arg3[%255, %c0_72, %c0_73] : memref<8x2x32xf32, #tpu.memory_space<vmem>>, vector<1x2x32xf32>
    %257 = vector.shape_cast %256 : vector<1x2x32xf32> to vector<2x32xf32>
    %258 = vector.shape_cast %253 : vector<2x32xf32> to vector<1x2x32xf32>
    tpu.vector_store %arg3[%255, %c0_72, %c0_73], %258 {strides = array<i32>} : memref<8x2x32xf32, #tpu.memory_space<vmem>>, vector<1x2x32xf32>,
    %c8_i32 = arith.constant 8 : i32
    %259 = vector.extract_strided_slice %247 {offsets = [0, 0], sizes = [2, 32], strides = [1, 1]} : vector<2x64xf32> to vector<2x32xf32>
    %c0_74 = arith.constant 0 : index
    %c0_75 = arith.constant 0 : index
    %c0_76 = arith.constant 0 : index
    %260 = vector.load %arg4[%c0_74, %c0_75, %c0_76] : memref<2x2x32xf32, #tpu.memory_space<vmem>>, vector<1x2x32xf32>
    %261 = vector.shape_cast %260 : vector<1x2x32xf32> to vector<2x32xf32>
    %262 = vector.shape_cast %259 : vector<2x32xf32> to vector<1x2x32xf32>
    tpu.vector_store %arg4[%c0_74, %c0_75, %c0_76], %262 {strides = array<i32>} : memref<2x2x32xf32, #tpu.memory_space<vmem>>, vector<1x2x32xf32>,
    %263 = vector.extract_strided_slice %247 {offsets = [0, 32], sizes = [2, 32], strides = [1, 1]} : vector<2x64xf32> to vector<2x32xf32>
    %c1 = arith.constant 1 : index
    %c0_77 = arith.constant 0 : index
    %c0_78 = arith.constant 0 : index
    %264 = vector.load %arg4[%c1, %c0_77, %c0_78] : memref<2x2x32xf32, #tpu.memory_space<vmem>>, vector<1x2x32xf32>
    %265 = vector.shape_cast %264 : vector<1x2x32xf32> to vector<2x32xf32>
    %266 = vector.shape_cast %263 : vector<2x32xf32> to vector<1x2x32xf32>
    tpu.vector_store %arg4[%c1, %c0_77, %c0_78], %266 {strides = array<i32>} : memref<2x2x32xf32, #tpu.memory_space<vmem>>, vector<1x2x32xf32>,
    %267 = vector.extract_strided_slice %245 {offsets = [0, 0], sizes = [2, 32], strides = [1, 1]} : vector<2x64xf32> to vector<2x32xf32>
    %c0_79 = arith.constant 0 : index
    %c0_80 = arith.constant 0 : index
    %c0_81 = arith.constant 0 : index
    %268 = vector.load %arg5[%c0_79, %c0_80, %c0_81] : memref<2x2x32xf32, #tpu.memory_space<vmem>>, vector<1x2x32xf32>
    %269 = vector.shape_cast %268 : vector<1x2x32xf32> to vector<2x32xf32>
    %270 = vector.shape_cast %267 : vector<2x32xf32> to vector<1x2x32xf32>
    tpu.vector_store %arg5[%c0_79, %c0_80, %c0_81], %270 {strides = array<i32>} : memref<2x2x32xf32, #tpu.memory_space<vmem>>, vector<1x2x32xf32>,
    %271 = vector.extract_strided_slice %245 {offsets = [0, 32], sizes = [2, 32], strides = [1, 1]} : vector<2x64xf32> to vector<2x32xf32>
    %c1_82 = arith.constant 1 : index
    %c0_83 = arith.constant 0 : index
    %c0_84 = arith.constant 0 : index
    %272 = vector.load %arg5[%c1_82, %c0_83, %c0_84] : memref<2x2x32xf32, #tpu.memory_space<vmem>>, vector<1x2x32xf32>
    %273 = vector.shape_cast %272 : vector<1x2x32xf32> to vector<2x32xf32>
    %274 = vector.shape_cast %271 : vector<2x32xf32> to vector<1x2x32xf32>
    tpu.vector_store %arg5[%c1_82, %c0_83, %c0_84], %274 {strides = array<i32>} : memref<2x2x32xf32, #tpu.memory_space<vmem>>, vector<1x2x32xf32>,
    return
  }
}

</mosaic_0001>

<bundles_post_ra>
// kernel: a_call__.1
= control target key start
LH: loop header
LB: loop body
LE: loop exit
PB: predicated region body
PF: predicated region fallthrough
CT: control target
= control target key end

     0   :  { %11 = vsyncpa [#allocation3], 0  ;;  %s1491_s0 = inlined_call_operand.vmem [shape: f32[8,2,256], index: 0, kind: input, shape index: {}]   ;;  %s1492_s1 = inlined_call_operand.vmem [shape: f32[64,256], index: 1, kind: input, shape index: {}]   ;;  %s1493_s2 = inlined_call_operand.vmem [shape: f32[8,2,32], index: 2, kind: output, shape index: {0}]   ;;  %s1494_s3 = inlined_call_operand.vmem [shape: f32[8,2,32], index: 3, kind: output, shape index: {1}]   ;;  %s1495_s4 = inlined_call_operand.hbm [shape: f32[2,2,32], index: 4, kind: output, shape index: {2}]   ;;  %s1496_s5 = inlined_call_operand.hbm [shape: f32[2,2,32], index: 5, kind: output, shape index: {3}]  }
   0x1   :  { %v1114_v0 = vld [vmem:[%s1492_s1 + $0x78] sm:$0xff]  ;;  %v1119_v1 = vld [vmem:[%s1492_s1 + $0x70] sm:$0xff]  ;;  %v1124_v2 = vld [vmem:[%s1492_s1 + $0x68] sm:$0xff] }
   0x2   :  { %66 = vmatpush.msra.mxu1 %v1114_v0  ;;  %46 = vmatpush.msra.mxu0 %v1119_v1  ;;  %v1131_v3 = vld [vmem:[%s1492_s1 + $0x60] sm:$0xff]  ;;  %v1136_v4 = vld [vmem:[%s1492_s1 + $0x58] sm:$0xff]  ;;  %v1141_v5 = vld [vmem:[%s1492_s1 + $0x50] sm:$0xff] }
   0x3   :  { %148 = vmatpush.msra.mxu2 %v1119_v1  ;;  %168 = vmatpush.msra.mxu3 %v1114_v0  ;;  %v1150_v6 = vld [vmem:[%s1492_s1 + $0x48] sm:$0xff]  ;;  %v1155_v7 = vld [vmem:[%s1492_s1 + $0x40] sm:$0xff] }
   0x4   :  { %67 = vmatpush.msra.mxu1 %v1124_v2  ;;  %47 = vmatpush.msra.mxu0 %v1131_v3 }
   0x5   :  { %149 = vmatpush.msra.mxu2 %v1131_v3  ;;  %169 = vmatpush.msra.mxu3 %v1124_v2 }
   0x6   :  { %68 = vmatpush.msra.mxu1 %v1136_v4  ;;  %48 = vmatpush.msra.mxu0 %v1141_v5 }
   0x7   :  { %12 = vsyncpa [#allocation5], 0  ;;  %v1164_v8 = vld [vmem:[%s1492_s1 + $0x38] sm:$0xff]  ;;  %v1169_v9 = vld [vmem:[%s1492_s1 + $0x30] sm:$0xff]  ;;  %150 = vmatpush.msra.mxu2 %v1141_v5  ;;  %170 = vmatpush.msra.mxu3 %v1136_v4  ;;  %v1074_v16 = vmov 0.0   ;;  %vm81_vm0 = vcmask 1041408  }
   0x8   :  { %69 = vmatpush.msra.mxu1 %v1150_v6  ;;  %49 = vmatpush.msra.mxu0 %v1155_v7  ;;  %v1178_v10 = vld [vmem:[%s1492_s1 + $0x28] sm:$0xff]  ;;  %v1183_v11 = vld [vmem:[%s1492_s1 + $0x20] sm:$0xff]  ;;  %v1192_v12 = vld [vmem:[%s1492_s1 + $0x18] sm:$0xff]  ;;  %s1075_s26 = smov 64   ;;  %vm126_vm5 = vcmask 254976   ;;  %vm34_vm6 = vcmask 523264  }
   0x9   :  { %151 = vmatpush.msra.mxu2 %v1155_v7  ;;  %171 = vmatpush.msra.mxu3 %v1150_v6  ;;  %v1197_v13 = vld [vmem:[%s1492_s1 + $0x10] sm:$0xff]  ;;  %v1206_v14 = vld [vmem:[%s1492_s1 + $0x8] sm:$0xff]  ;;  %v1211_v15 = vld [vmem:[%s1492_s1] sm:$0xff]  ;;  %s1076_s30 = smov 96   ;;  %s1078_s17 = smov [#allocation2]  }
   0xa   :  { %70 = vmatpush.msra.mxu1 %v1164_v8  ;;  %50 = vmatpush.msra.mxu0 %v1169_v9  ;;  %v33_v20 = vld [vmem:[%s1491_s0] sm:$0xf]  ;;  %v910_v49 = vld [vmem:[%s1491_s0 + $0x4] sm:$0xf]  ;;  %s872_s18 = sshll.u32 %s1078_s17, 4  ;;  %s874_s21 = sshll.u32 %s1495_s4, 4  ;;  %s873_s18 = int_to_ptr.vmem [resolvable:$true] %s872_s18  ;;  %s875_s21 = int_to_ptr.hbm [resolvable:$true] %s874_s21 }
   0xb   :  { %152 = vmatpush.msra.mxu2 %v1169_v9  ;;  %172 = vmatpush.msra.mxu3 %v1164_v8  ;;  %s1079_s23 = smov 2   ;;  %s1080_s24 = smov [#allocation4]  }
   0xc   :  { %71 = vmatpush.msra.mxu1 %v1178_v10  ;;  %51 = vmatpush.msra.mxu0 %v1183_v11  ;;  %s885_s1 = sshll.u32 %s1080_s24, 4  ;;  %s887_s28 = sshll.u32 %s1496_s5, 4  ;;  %s886_s1 = int_to_ptr.vmem [resolvable:$true] %s885_s1  ;;  %s888_s28 = int_to_ptr.hbm [resolvable:$true] %s887_s28 }
   0xd   :  { %153 = vmatpush.msra.mxu2 %v1183_v11  ;;  %173 = vmatpush.msra.mxu3 %v1178_v10 }
   0xe   :  { %72 = vmatpush.msra.mxu1 %v1192_v12  ;;  %52 = vmatpush.msra.mxu0 %v1197_v13 }
   0xf   :  { %154 = vmatpush.msra.mxu2 %v1197_v13  ;;  %174 = vmatpush.msra.mxu3 %v1192_v12 }
  0x10   :  { %73 = vmatpush.msra.mxu1 %v1206_v14  ;;  %53 = vmatpush.msra.mxu0 %v1211_v15 }
  0x11   :  { %74 = vmatmul.f32.vlgmr.msra.gmra.mxu1 %v1074_v16  ;;  %54 = vmatmul.f32.vlgmr.msra.gmra.mxu0 %v1074_v16 }
  0x12   :  { %155 = vmatpush.msra.mxu2 %v1211_v15  ;;  %175 = vmatpush.msra.mxu3 %v1206_v14 }
  0x13   :  { %249 = vmatpush.msrb.mxu0 %v1119_v1  ;;  %269 = vmatpush.msrb.mxu1 %v1114_v0 }
  0x14   :  { %350 = vmatpush.msrb.mxu2 %v1119_v1  ;;  %370 = vmatpush.msrb.mxu3 %v1114_v0 }
  0x15   :  { %250 = vmatpush.msrb.mxu0 %v1131_v3  ;;  %270 = vmatpush.msrb.mxu1 %v1124_v2 }
  0x16   :  { %351 = vmatpush.msrb.mxu2 %v1131_v3  ;;  %371 = vmatpush.msrb.mxu3 %v1124_v2 }
  0x17   :  { %251 = vmatpush.msrb.mxu0 %v1141_v5  ;;  %271 = vmatpush.msrb.mxu1 %v1136_v4 }
  0x18   :  { %352 = vmatpush.msrb.mxu2 %v1141_v5  ;;  %372 = vmatpush.msrb.mxu3 %v1136_v4 }
  0x19   :  { %252 = vmatpush.msrb.mxu0 %v1155_v7  ;;  %272 = vmatpush.msrb.mxu1 %v1150_v6 }
  0x1a   :  { %353 = vmatpush.msrb.mxu2 %v1155_v7  ;;  %373 = vmatpush.msrb.mxu3 %v1150_v6 }
  0x1b   :  { %253 = vmatpush.msrb.mxu0 %v1169_v9  ;;  %273 = vmatpush.msrb.mxu1 %v1164_v8 }
  0x1c   :  { %354 = vmatpush.msrb.mxu2 %v1169_v9  ;;  %374 = vmatpush.msrb.mxu3 %v1164_v8 }
  0x1d   :  { %254 = vmatpush.msrb.mxu0 %v1183_v11  ;;  %274 = vmatpush.msrb.mxu1 %v1178_v10 }
  0x1e   :  { %355 = vmatpush.msrb.mxu2 %v1183_v11  ;;  %375 = vmatpush.msrb.mxu3 %v1178_v10 }
  0x1f   :  { %255 = vmatpush.msrb.mxu0 %v1197_v13  ;;  %275 = vmatpush.msrb.mxu1 %v1192_v12 }
  0x20   :  { %356 = vmatpush.msrb.mxu2 %v1197_v13  ;;  %376 = vmatpush.msrb.mxu3 %v1192_v12 }
  0x21   :  { %256 = vmatpush.msrb.mxu0 %v1211_v15  ;;  %276 = vmatpush.msrb.mxu1 %v1206_v14 }
  0x22   :  { %357 = vmatpush.msrb.mxu2 %v1211_v15  ;;  %377 = vmatpush.msrb.mxu3 %v1206_v14 }
  0x23   :  { %451 = vmatpush.msra.mxu0 %v1119_v1  ;;  %471 = vmatpush.msra.mxu1 %v1114_v0 }
  0x25   :  { %452 = vmatpush.msra.mxu0 %v1131_v3  ;;  %472 = vmatpush.msra.mxu1 %v1124_v2 }
  0x27   :  { %453 = vmatpush.msra.mxu0 %v1141_v5  ;;  %473 = vmatpush.msra.mxu1 %v1136_v4 }
  0x29   :  { %454 = vmatpush.msra.mxu0 %v1155_v7  ;;  %474 = vmatpush.msra.mxu1 %v1150_v6 }
  0x2b   :  { %455 = vmatpush.msra.mxu0 %v1169_v9  ;;  %475 = vmatpush.msra.mxu1 %v1164_v8 }
  0x2d   :  { %456 = vmatpush.msra.mxu0 %v1183_v11  ;;  %476 = vmatpush.msra.mxu1 %v1178_v10 }
  0x2f   :  { %457 = vmatpush.msra.mxu0 %v1197_v13  ;;  %477 = vmatpush.msra.mxu1 %v1192_v12 }
  0x31   :  { %458 = vmatpush.msra.mxu0 %v1211_v15  ;;  %478 = vmatpush.msra.mxu1 %v1206_v14 }
  0x8e   :  { %v75_v17 = vpop.f32.mrf.mxu1  ;;  %v55_v18 = vpop.f32.mrf.mxu0 }
  0x8f   :  { %v80_v19 = vrot.slane %v75_v17, 6 }
  0x91   :  { %v82_v21 = vsel %vm81_vm0, %v55_v18, %v80_v19 }
  0x92   :  { %v84_v22 = vadd.f32 %v82_v21, %v33_v20 }
  0x94   :  { %105 = vrot.lane.b32.xlu0 %v84_v22, %s1075_s26  ;;  %v908_v23 = vmul.f32 -1.442695, %v84_v22 }
  0x96   :  { %958 = vpow2.f32 %v908_v23 }
  0x9c   :  { %v959_v24 = vpop.eup %958 }
  0x9d   :  { %v88_v25 = vadd.f32 1.0, %v959_v24 }
  0x9f   :  { %960 = vrcp.f32 %v88_v25  ;;  %v100_v33 = vand.u32 2147483648, %v88_v25  ;;  %vm94_vm2 = vweird.f32 %v88_v25  ;;  %v98_v34 = vand.u32 2147483647, %v88_v25 }
  0xa1   :  { %v101_v36 = vor.u32 1.1754944e-38, %v100_v33  ;;  %vm99_vm4 = vcmp.eq.f32.partialorder %v98_v34, 8.507059e+37 }
  0xa5   :  { %v961_v26 = vpop.eup %960 }
  0xa6   :  { %v90_v27 = vmul.f32 %v961_v26, %v88_v25  ;;  %vm95_vm1 = vweird.f32 %v961_v26 }
  0xa7   :  { %vm96_vm3 = vmor %vm94_vm2, %vm95_vm1 }
  0xa8   :  { %v91_v28 = vsub.f32 1.0, %v90_v27 }
  0xaa   :  { %v92_v29 = vmul.f32 %v961_v26, %v91_v28 }
  0xac   :  { %v93_v32 = vadd.f32 %v961_v26, %v92_v29 }
  0xae   :  { %v97_v35 = vsel %vm96_vm3, %v961_v26, %v93_v32  ;;  %v916_v32 = vld [vmem:[%s1491_s0 + $0x8] sm:$0xf] }
  0xaf   :  { %v102_v38 = vsel %vm99_vm4, %v101_v36, %v97_v35 }
  0xb0   :  { %v110_v40 = vmul.f32 0.0, %v102_v38  ;;  %v119_v44 = vrot.slane %v102_v38, 2 }
 0x106   :  { %v106_v30 = vpop.permute.xlu0 %105 }
 0x107   :  { %v107_v31 = vrot.slane %v106_v30, 2 }
 0x109   :  { %962 = vtanh.f32 %v107_v31 }
 0x10f   :  { %v963_v37 = vpop.eup %962 }
 0x110   :  { %v111_v39 = vmul.f32 %v963_v37, %v102_v38 }
 0x112   :  { %113 = vrot.lane.b32.xlu0 %v111_v39, %s1075_s26 }
 0x184   :  { %v114_v41 = vpop.permute.xlu0 %113 }
 0x185   :  { %v116_v42 = vadd.f32 %v114_v41, %v110_v40 }
 0x187   :  { %964 = vtanh.f32 %v116_v42 }
 0x18d   :  { %v965_v43 = vpop.eup %964 }
 0x18e   :  { %122 = vrot.lane.b32.xlu1 %v965_v43, %s1075_s26 }
 0x200   :  { %v123_v45 = vpop.permute.xlu1 %122 }
 0x201   :  { %v125_v46 = vmul.f32 %v123_v45, %v119_v44 }
 0x203   :  { %127 = vst.msk [vmem:[%s1493_s2] sm:$0x3] %vm126_vm5, %v125_v46  ;;  %911 = vmatmul.msk.f32.vlgmr.msra.gmra.mxu2 %vm34_vm6, %v125_v46  ;;  %912 = vmatmul.msk.f32.vlgmr.msra.gmra.mxu3 %vm34_vm6, %v125_v46 }
 0x204   :  { %129 = vst [vmem:[#allocation1] ss:$4 sm:$0xff] %v125_v46  ;;  %552 = vmatpush.msra.mxu2 %v1119_v1  ;;  %572 = vmatpush.msra.mxu3 %v1114_v0 }
 0x206   :  { %553 = vmatpush.msra.mxu2 %v1131_v3  ;;  %573 = vmatpush.msra.mxu3 %v1124_v2 }
 0x208   :  { %554 = vmatpush.msra.mxu2 %v1141_v5  ;;  %574 = vmatpush.msra.mxu3 %v1136_v4 }
 0x20a   :  { %555 = vmatpush.msra.mxu2 %v1155_v7  ;;  %575 = vmatpush.msra.mxu3 %v1150_v6 }
 0x20b   :  { %v1307_v29 = vld.sshfl [vmem:[#allocation1] sm:$0xff pattern:$0x73625140] }
 0x20c   :  { %556 = vmatpush.msra.mxu2 %v1169_v9  ;;  %576 = vmatpush.msra.mxu3 %v1164_v8 }
 0x20e   :  { %557 = vmatpush.msra.mxu2 %v1183_v11  ;;  %577 = vmatpush.msra.mxu3 %v1178_v10 }
 0x210   :  { %558 = vmatpush.msra.mxu2 %v1197_v13  ;;  %578 = vmatpush.msra.mxu3 %v1192_v12 }
 0x212   :  { %559 = vmatpush.msra.mxu2 %v1211_v15  ;;  %579 = vmatpush.msra.mxu3 %v1206_v14 }
 0x286   :  { %v177_v47 = vpop.f32.mrf.mxu3  ;;  %v157_v50 = vpop.f32.mrf.mxu2 }
 0x287   :  { %v182_v48 = vrot.slane %v177_v47, 6 }
 0x289   :  { %v183_v51 = vsel %vm81_vm0, %v157_v50, %v182_v48 }
 0x28a   :  { %v185_v52 = vadd.f32 %v910_v49, %v183_v51 }
 0x28c   :  { %206 = vrot.lane.b32.xlu1 %v185_v52, %s1075_s26  ;;  %v913_v53 = vmul.f32 -1.442695, %v185_v52 }
 0x28e   :  { %966 = vpow2.f32 %v913_v53 }
 0x294   :  { %v967_v54 = vpop.eup %966 }
 0x295   :  { %v189_v55 = vadd.f32 1.0, %v967_v54 }
 0x297   :  { %968 = vrcp.f32 %v189_v55  ;;  %v201_v63 = vand.u32 2147483648, %v189_v55  ;;  %vm195_vm8 = vweird.f32 %v189_v55  ;;  %v199_v16 = vand.u32 2147483647, %v189_v55 }
 0x299   :  { %v202_v18 = vor.u32 1.1754944e-38, %v201_v63  ;;  %vm200_vm10 = vcmp.eq.f32.partialorder %v199_v16, 8.507059e+37 }
 0x29d   :  { %v969_v56 = vpop.eup %968 }
 0x29e   :  { %v191_v57 = vmul.f32 %v969_v56, %v189_v55  ;;  %vm196_vm7 = vweird.f32 %v969_v56 }
 0x29f   :  { %vm197_vm9 = vmor %vm195_vm8, %vm196_vm7 }
 0x2a0   :  { %v192_v58 = vsub.f32 1.0, %v191_v57 }
 0x2a2   :  { %v193_v59 = vmul.f32 %v969_v56, %v192_v58 }
 0x2a4   :  { %v194_v62 = vadd.f32 %v969_v56, %v193_v59 }
 0x2a6   :  { %v198_v17 = vsel %vm197_vm9, %v969_v56, %v194_v62 }
 0x2a7   :  { %v203_v20 = vsel %vm200_vm10, %v202_v18, %v198_v17 }
 0x2a8   :  { %v211_v22 = vmul.f32 %v203_v20, %v116_v42  ;;  %v220_v26 = vrot.slane %v203_v20, 2 }
 0x2fe   :  { %v207_v60 = vpop.permute.xlu1 %206 }
 0x2ff   :  { %v208_v61 = vrot.slane %v207_v60, 2 }
 0x301   :  { %970 = vtanh.f32 %v208_v61 }
 0x307   :  { %v971_v19 = vpop.eup %970 }
 0x308   :  { %v212_v21 = vmul.f32 %v971_v19, %v203_v20 }
 0x30a   :  { %214 = vrot.lane.b32.xlu2 %v212_v21, %s1075_s26 }
 0x364   :  { %v215_v23 = vpop.permute.xlu2 %214 }
 0x365   :  { %v217_v24 = vadd.f32 %v215_v23, %v211_v22 }
 0x367   :  { %972 = vtanh.f32 %v217_v24 }
 0x36d   :  { %v973_v25 = vpop.eup %972 }
 0x36e   :  { %223 = vrot.lane.b32.xlu2 %v973_v25, %s1075_s26 }
 0x3c8   :  { %v224_v27 = vpop.permute.xlu2 %223 }
 0x3c9   :  { %v226_v28 = vmul.f32 %v224_v27, %v220_v26 }
 0x3cb   :  { %914 = vst.msk [vmem:[%s1493_s2 + $0x2] sm:$0x3] %vm126_vm5, %v226_v28  ;;  %917 = vmatmul.msk.f32.vlgmr.msrb.gmra.mxu0 %vm34_vm6, %v226_v28  ;;  %918 = vmatmul.msk.f32.vlgmr.msrb.gmra.mxu1 %vm34_vm6, %v226_v28 }
 0x3cc   :  { %230 = vst [vmem:[#allocation1] ss:$4 sm:$0xff] %v226_v28  ;;  %653 = vmatpush.msrb.mxu0 %v1119_v1  ;;  %673 = vmatpush.msrb.mxu1 %v1114_v0 }
 0x3ce   :  { %654 = vmatpush.msrb.mxu0 %v1131_v3  ;;  %674 = vmatpush.msrb.mxu1 %v1124_v2 }
 0x3d0   :  { %655 = vmatpush.msrb.mxu0 %v1141_v5  ;;  %675 = vmatpush.msrb.mxu1 %v1136_v4 }
 0x3d2   :  { %656 = vmatpush.msrb.mxu0 %v1155_v7  ;;  %676 = vmatpush.msrb.mxu1 %v1150_v6 }
 0x3d3   :  { %v1338_v60 = vld.sshfl [vmem:[#allocation1] sm:$0xff pattern:$0x73625140] }
 0x3d4   :  { %657 = vmatpush.msrb.mxu0 %v1169_v9  ;;  %677 = vmatpush.msrb.mxu1 %v1164_v8 }
 0x3d6   :  { %658 = vmatpush.msrb.mxu0 %v1183_v11  ;;  %678 = vmatpush.msrb.mxu1 %v1178_v10 }
 0x3d8   :  { %659 = vmatpush.msrb.mxu0 %v1197_v13  ;;  %679 = vmatpush.msrb.mxu1 %v1192_v12 }
 0x3da   :  { %660 = vmatpush.msrb.mxu0 %v1211_v15  ;;  %680 = vmatpush.msrb.mxu1 %v1206_v14 }
 0x448   :  { %v278_v30 = vpop.f32.mrf.mxu1  ;;  %v258_v33 = vpop.f32.mrf.mxu0 }
 0x449   :  { %v283_v31 = vrot.slane %v278_v30, 6 }
 0x44b   :  { %v284_v34 = vsel %vm81_vm0, %v258_v33, %v283_v31  ;;  %v928_v31 = vld [vmem:[%s1491_s0 + $0x10] sm:$0xf] }
 0x44c   :  { %v286_v35 = vadd.f32 %v916_v32, %v284_v34 }
 0x44e   :  { %307 = vrot.lane.b32.xlu0 %v286_v35, %s1075_s26  ;;  %v919_v36 = vmul.f32 -1.442695, %v286_v35 }
 0x450   :  { %974 = vpow2.f32 %v919_v36 }
 0x456   :  { %v975_v37 = vpop.eup %974 }
 0x457   :  { %v290_v38 = vadd.f32 1.0, %v975_v37 }
 0x459   :  { %976 = vrcp.f32 %v290_v38  ;;  %v302_v46 = vand.u32 2147483648, %v290_v38  ;;  %vm296_vm12 = vweird.f32 %v290_v38  ;;  %v300_v47 = vand.u32 2147483647, %v290_v38 }
 0x45b   :  { %v303_v49 = vor.u32 1.1754944e-38, %v302_v46  ;;  %vm301_vm14 = vcmp.eq.f32.partialorder %v300_v47, 8.507059e+37 }
 0x45f   :  { %v977_v39 = vpop.eup %976 }
 0x460   :  { %v292_v40 = vmul.f32 %v977_v39, %v290_v38  ;;  %vm297_vm11 = vweird.f32 %v977_v39 }
 0x461   :  { %vm298_vm13 = vmor %vm296_vm12, %vm297_vm11 }
 0x462   :  { %v293_v41 = vsub.f32 1.0, %v292_v40 }
 0x464   :  { %v294_v42 = vmul.f32 %v977_v39, %v293_v41 }
 0x466   :  { %v295_v45 = vadd.f32 %v977_v39, %v294_v42 }
 0x468   :  { %v299_v48 = vsel %vm298_vm13, %v977_v39, %v295_v45 }
 0x469   :  { %v304_v51 = vsel %vm301_vm14, %v303_v49, %v299_v48 }
 0x46a   :  { %v312_v53 = vmul.f32 %v304_v51, %v217_v24  ;;  %v321_v57 = vrot.slane %v304_v51, 2 }
 0x4c0   :  { %v308_v43 = vpop.permute.xlu0 %307 }
 0x4c1   :  { %v309_v44 = vrot.slane %v308_v43, 2 }
 0x4c3   :  { %978 = vtanh.f32 %v309_v44 }
 0x4c9   :  { %v979_v50 = vpop.eup %978 }
 0x4ca   :  { %v313_v52 = vmul.f32 %v979_v50, %v304_v51 }
 0x4cc   :  { %315 = vrot.lane.b32.xlu1 %v313_v52, %s1075_s26 }
 0x53e   :  { %v316_v54 = vpop.permute.xlu1 %315 }
 0x53f   :  { %v318_v55 = vadd.f32 %v316_v54, %v312_v53 }
 0x541   :  { %980 = vtanh.f32 %v318_v55 }
 0x547   :  { %v981_v56 = vpop.eup %980 }
 0x548   :  { %324 = vrot.lane.b32.xlu2 %v981_v56, %s1075_s26 }
 0x5a2   :  { %v325_v58 = vpop.permute.xlu2 %324 }
 0x5a3   :  { %v327_v59 = vmul.f32 %v325_v58, %v321_v57 }
 0x5a5   :  { %920 = vst.msk [vmem:[%s1493_s2 + $0x4] sm:$0x3] %vm126_vm5, %v327_v59  ;;  %923 = vmatmul.msk.f32.vlgmr.msrb.gmra.mxu2 %vm34_vm6, %v327_v59  ;;  %924 = vmatmul.msk.f32.vlgmr.msrb.gmra.mxu3 %vm34_vm6, %v327_v59 }
 0x5a6   :  { %331 = vst [vmem:[#allocation1] ss:$4 sm:$0xff] %v327_v59  ;;  %754 = vmatpush.msrb.mxu2 %v1119_v1  ;;  %774 = vmatpush.msrb.mxu3 %v1114_v0 }
 0x5a8   :  { %755 = vmatpush.msrb.mxu2 %v1131_v3  ;;  %775 = vmatpush.msrb.mxu3 %v1124_v2  ;;  %v922_v2 = vld [vmem:[%s1491_s0 + $0xc] sm:$0xf] }
 0x5aa   :  { %756 = vmatpush.msrb.mxu2 %v1141_v5  ;;  %776 = vmatpush.msrb.mxu3 %v1136_v4 }
 0x5ac   :  { %757 = vmatpush.msrb.mxu2 %v1155_v7  ;;  %777 = vmatpush.msrb.mxu3 %v1150_v6 }
 0x5ad   :  { %v1369_v27 = vld.sshfl [vmem:[#allocation1] sm:$0xff pattern:$0x73625140] }
 0x5ae   :  { %758 = vmatpush.msrb.mxu2 %v1169_v9  ;;  %778 = vmatpush.msrb.mxu3 %v1164_v8 }
 0x5b0   :  { %759 = vmatpush.msrb.mxu2 %v1183_v11  ;;  %779 = vmatpush.msrb.mxu3 %v1178_v10 }
 0x5b2   :  { %760 = vmatpush.msrb.mxu2 %v1197_v13  ;;  %780 = vmatpush.msrb.mxu3 %v1192_v12 }
 0x5b4   :  { %761 = vmatpush.msrb.mxu2 %v1211_v15  ;;  %781 = vmatpush.msrb.mxu3 %v1206_v14 }
 0x628   :  { %v379_v0 = vpop.f32.mrf.mxu3  ;;  %v359_v3 = vpop.f32.mrf.mxu2 }
 0x629   :  { %v384_v1 = vrot.slane %v379_v0, 6 }
 0x62b   :  { %v385_v4 = vsel %vm81_vm0, %v359_v3, %v384_v1 }
 0x62c   :  { %v387_v5 = vadd.f32 %v922_v2, %v385_v4  ;;  %v934_v2 = vld [vmem:[%s1491_s0 + $0x14] sm:$0xf] }
 0x62e   :  { %408 = vrot.lane.b32.xlu0 %v387_v5, %s1075_s26  ;;  %v925_v6 = vmul.f32 -1.442695, %v387_v5 }
 0x630   :  { %982 = vpow2.f32 %v925_v6 }
 0x636   :  { %v983_v7 = vpop.eup %982 }
 0x637   :  { %v391_v8 = vadd.f32 1.0, %v983_v7 }
 0x639   :  { %984 = vrcp.f32 %v391_v8  ;;  %v403_v61 = vand.u32 2147483648, %v391_v8  ;;  %vm397_vm1 = vweird.f32 %v391_v8  ;;  %v401_v62 = vand.u32 2147483647, %v391_v8 }
 0x63b   :  { %v404_v16 = vor.u32 1.1754944e-38, %v403_v61  ;;  %vm402_vm3 = vcmp.eq.f32.partialorder %v401_v62, 8.507059e+37 }
 0x63f   :  { %v985_v9 = vpop.eup %984 }
 0x640   :  { %v393_v10 = vmul.f32 %v985_v9, %v391_v8  ;;  %vm398_vm15 = vweird.f32 %v985_v9 }
 0x641   :  { %vm399_vm2 = vmor %vm397_vm1, %vm398_vm15 }
 0x642   :  { %v394_v11 = vsub.f32 1.0, %v393_v10 }
 0x644   :  { %v395_v12 = vmul.f32 %v985_v9, %v394_v11 }
 0x646   :  { %v396_v15 = vadd.f32 %v985_v9, %v395_v12 }
 0x648   :  { %v400_v63 = vsel %vm399_vm2, %v985_v9, %v396_v15 }
 0x649   :  { %v405_v18 = vsel %vm402_vm3, %v404_v16, %v400_v63 }
 0x64a   :  { %v413_v20 = vmul.f32 %v405_v18, %v318_v55  ;;  %v422_v24 = vrot.slane %v405_v18, 2 }
 0x6a0   :  { %v409_v13 = vpop.permute.xlu0 %408 }
 0x6a1   :  { %v410_v14 = vrot.slane %v409_v13, 2 }
 0x6a3   :  { %986 = vtanh.f32 %v410_v14 }
 0x6a9   :  { %v987_v17 = vpop.eup %986 }
 0x6aa   :  { %v414_v19 = vmul.f32 %v987_v17, %v405_v18 }
 0x6ac   :  { %416 = vrot.lane.b32.xlu1 %v414_v19, %s1075_s26 }
 0x71e   :  { %v417_v21 = vpop.permute.xlu1 %416 }
 0x71f   :  { %v419_v22 = vadd.f32 %v417_v21, %v413_v20 }
 0x721   :  { %988 = vtanh.f32 %v419_v22 }
 0x727   :  { %v989_v23 = vpop.eup %988 }
 0x728   :  { %425 = vrot.lane.b32.xlu2 %v989_v23, %s1075_s26 }
 0x782   :  { %v426_v25 = vpop.permute.xlu2 %425 }
 0x783   :  { %v428_v26 = vmul.f32 %v426_v25, %v422_v24 }
 0x785   :  { %926 = vst.msk [vmem:[%s1493_s2 + $0x6] sm:$0x3] %vm126_vm5, %v428_v26  ;;  %929 = vmatmul.msk.f32.vlgmr.msra.gmra.mxu0 %vm34_vm6, %v428_v26  ;;  %930 = vmatmul.msk.f32.vlgmr.msra.gmra.mxu1 %vm34_vm6, %v428_v26 }
 0x786   :  { %432 = vst [vmem:[#allocation1] ss:$4 sm:$0xff] %v428_v26 }
 0x78d   :  { %v1390_v59 = vld.sshfl [vmem:[#allocation1] sm:$0xff pattern:$0x73625140] }
 0x802   :  { %v480_v28 = vpop.f32.mrf.mxu1  ;;  %v460_v32 = vpop.f32.mrf.mxu0 }
 0x803   :  { %v485_v30 = vrot.slane %v480_v28, 6 }
 0x805   :  { %v486_v33 = vsel %vm81_vm0, %v460_v32, %v485_v30  ;;  %v940_v32 = vld [vmem:[%s1491_s0 + $0x18] sm:$0xf] }
 0x806   :  { %v488_v34 = vadd.f32 %v928_v31, %v486_v33 }
 0x808   :  { %509 = vrot.lane.b32.xlu0 %v488_v34, %s1075_s26  ;;  %v931_v35 = vmul.f32 -1.442695, %v488_v34 }
 0x80a   :  { %990 = vpow2.f32 %v931_v35 }
 0x810   :  { %v991_v36 = vpop.eup %990 }
 0x811   :  { %v492_v37 = vadd.f32 1.0, %v991_v36 }
 0x813   :  { %992 = vrcp.f32 %v492_v37  ;;  %v504_v45 = vand.u32 2147483648, %v492_v37  ;;  %vm498_vm7 = vweird.f32 %v492_v37  ;;  %v502_v46 = vand.u32 2147483647, %v492_v37 }
 0x815   :  { %v505_v48 = vor.u32 1.1754944e-38, %v504_v45  ;;  %vm503_vm9 = vcmp.eq.f32.partialorder %v502_v46, 8.507059e+37 }
 0x819   :  { %v993_v38 = vpop.eup %992 }
 0x81a   :  { %v494_v39 = vmul.f32 %v993_v38, %v492_v37  ;;  %vm499_vm4 = vweird.f32 %v993_v38 }
 0x81b   :  { %vm500_vm8 = vmor %vm498_vm7, %vm499_vm4 }
 0x81c   :  { %v495_v40 = vsub.f32 1.0, %v494_v39 }
 0x81e   :  { %v496_v41 = vmul.f32 %v993_v38, %v495_v40 }
 0x820   :  { %v497_v44 = vadd.f32 %v993_v38, %v496_v41 }
 0x822   :  { %v501_v47 = vsel %vm500_vm8, %v993_v38, %v497_v44 }
 0x823   :  { %v506_v50 = vsel %vm503_vm9, %v505_v48, %v501_v47 }
 0x824   :  { %v514_v52 = vmul.f32 %v506_v50, %v419_v22  ;;  %v523_v56 = vrot.slane %v506_v50, 2 }
 0x87a   :  { %v510_v42 = vpop.permute.xlu0 %509 }
 0x87b   :  { %v511_v43 = vrot.slane %v510_v42, 2 }
 0x87d   :  { %994 = vtanh.f32 %v511_v43 }
 0x883   :  { %v995_v49 = vpop.eup %994 }
 0x884   :  { %v515_v51 = vmul.f32 %v995_v49, %v506_v50 }
 0x886   :  { %517 = vrot.lane.b32.xlu1 %v515_v51, %s1075_s26 }
 0x8f8   :  { %v518_v53 = vpop.permute.xlu1 %517 }
 0x8f9   :  { %v520_v54 = vadd.f32 %v518_v53, %v514_v52 }
 0x8fb   :  { %996 = vtanh.f32 %v520_v54 }
 0x901   :  { %v997_v55 = vpop.eup %996 }
 0x902   :  { %526 = vrot.lane.b32.xlu2 %v997_v55, %s1075_s26 }
 0x95c   :  { %v527_v57 = vpop.permute.xlu2 %526 }
 0x95d   :  { %v529_v58 = vmul.f32 %v527_v57, %v523_v56 }
 0x95f   :  { %932 = vst.msk [vmem:[%s1493_s2 + $0x8] sm:$0x3] %vm126_vm5, %v529_v58  ;;  %935 = vmatmul.msk.f32.vlgmr.msra.gmra.mxu2 %vm34_vm6, %v529_v58  ;;  %936 = vmatmul.msk.f32.vlgmr.msra.gmra.mxu3 %vm34_vm6, %v529_v58 }
 0x960   :  { %533 = vst [vmem:[#allocation1] ss:$4 sm:$0xff] %v529_v58 }
 0x967   :  { %v1405_v28 = vld.sshfl [vmem:[#allocation1] sm:$0xff pattern:$0x73625140] }
 0x9e2   :  { %v581_v0 = vpop.f32.mrf.mxu3  ;;  %v561_v3 = vpop.f32.mrf.mxu2 }
 0x9e3   :  { %v586_v1 = vrot.slane %v581_v0, 6 }
 0x9e5   :  { %v587_v4 = vsel %vm81_vm0, %v561_v3, %v586_v1 }
 0x9e6   :  { %v589_v5 = vadd.f32 %v934_v2, %v587_v4  ;;  %v946_v4 = vld [vmem:[%s1491_s0 + $0x1c] sm:$0xf] }
 0x9e8   :  { %610 = vrot.lane.b32.xlu0 %v589_v5, %s1075_s26  ;;  %v937_v6 = vmul.f32 -1.442695, %v589_v5 }
 0x9ea   :  { %998 = vpow2.f32 %v937_v6 }
 0x9f0   :  { %v999_v7 = vpop.eup %998 }
 0x9f1   :  { %v593_v8 = vadd.f32 1.0, %v999_v7 }
 0x9f3   :  { %1000 = vrcp.f32 %v593_v8  ;;  %v605_v61 = vand.u32 2147483648, %v593_v8  ;;  %vm599_vm11 = vweird.f32 %v593_v8  ;;  %v603_v62 = vand.u32 2147483647, %v593_v8 }
 0x9f5   :  { %v606_v16 = vor.u32 1.1754944e-38, %v605_v61  ;;  %vm604_vm13 = vcmp.eq.f32.partialorder %v603_v62, 8.507059e+37 }
 0x9f9   :  { %v1001_v9 = vpop.eup %1000 }
 0x9fa   :  { %v595_v10 = vmul.f32 %v1001_v9, %v593_v8  ;;  %vm600_vm10 = vweird.f32 %v1001_v9 }
 0x9fb   :  { %vm601_vm12 = vmor %vm599_vm11, %vm600_vm10 }
 0x9fc   :  { %v596_v11 = vsub.f32 1.0, %v595_v10 }
 0x9fe   :  { %v597_v12 = vmul.f32 %v1001_v9, %v596_v11 }
 0xa00   :  { %v598_v15 = vadd.f32 %v1001_v9, %v597_v12 }
 0xa02   :  { %v602_v63 = vsel %vm601_vm12, %v1001_v9, %v598_v15 }
 0xa03   :  { %v607_v18 = vsel %vm604_vm13, %v606_v16, %v602_v63 }
 0xa04   :  { %v615_v20 = vmul.f32 %v607_v18, %v520_v54  ;;  %v624_v24 = vrot.slane %v607_v18, 2 }
 0xa5a   :  { %v611_v13 = vpop.permute.xlu0 %610 }
 0xa5b   :  { %v612_v14 = vrot.slane %v611_v13, 2 }
 0xa5d   :  { %1002 = vtanh.f32 %v612_v14 }
 0xa63   :  { %v1003_v17 = vpop.eup %1002 }
 0xa64   :  { %v616_v19 = vmul.f32 %v1003_v17, %v607_v18 }
 0xa66   :  { %618 = vrot.lane.b32.xlu1 %v616_v19, %s1075_s26 }
 0xad8   :  { %v619_v21 = vpop.permute.xlu1 %618 }
 0xad9   :  { %v621_v22 = vadd.f32 %v619_v21, %v615_v20 }
 0xadb   :  { %1004 = vtanh.f32 %v621_v22 }
 0xae1   :  { %v1005_v23 = vpop.eup %1004 }
 0xae2   :  { %627 = vrot.lane.b32.xlu2 %v1005_v23, %s1075_s26 }
 0xb3c   :  { %v628_v25 = vpop.permute.xlu2 %627 }
 0xb3d   :  { %v630_v26 = vmul.f32 %v628_v25, %v624_v24 }
 0xb3f   :  { %938 = vst.msk [vmem:[%s1493_s2 + $0xa] sm:$0x3] %vm126_vm5, %v630_v26  ;;  %941 = vmatmul.msk.f32.vlgmr.msrb.gmra.mxu0 %vm34_vm6, %v630_v26  ;;  %942 = vmatmul.msk.f32.vlgmr.msrb.gmra.mxu1 %vm34_vm6, %v630_v26 }
 0xb40   :  { %634 = vst [vmem:[#allocation1] ss:$4 sm:$0xff] %v630_v26 }
 0xb47   :  { %v1420_v1 = vld.sshfl [vmem:[#allocation1] sm:$0xff pattern:$0x73625140] }
 0xbbc   :  { %v682_v30 = vpop.f32.mrf.mxu1  ;;  %v662_v33 = vpop.f32.mrf.mxu0 }
 0xbbd   :  { %v687_v31 = vrot.slane %v682_v30, 6 }
 0xbbf   :  { %v688_v34 = vsel %vm81_vm0, %v662_v33, %v687_v31 }
 0xbc0   :  { %v690_v35 = vadd.f32 %v940_v32, %v688_v34 }
 0xbc2   :  { %711 = vrot.lane.b32.xlu0 %v690_v35, %s1075_s26  ;;  %v943_v36 = vmul.f32 -1.442695, %v690_v35 }
 0xbc4   :  { %1006 = vpow2.f32 %v943_v36 }
 0xbca   :  { %v1007_v37 = vpop.eup %1006 }
 0xbcb   :  { %v694_v38 = vadd.f32 1.0, %v1007_v37 }
 0xbcd   :  { %1008 = vrcp.f32 %v694_v38  ;;  %v706_v46 = vand.u32 2147483648, %v694_v38  ;;  %vm700_vm15 = vweird.f32 %v694_v38  ;;  %v704_v47 = vand.u32 2147483647, %v694_v38 }
 0xbcf   :  { %v707_v49 = vor.u32 1.1754944e-38, %v706_v46  ;;  %vm705_vm2 = vcmp.eq.f32.partialorder %v704_v47, 8.507059e+37 }
 0xbd3   :  { %v1009_v39 = vpop.eup %1008 }
 0xbd4   :  { %v696_v40 = vmul.f32 %v1009_v39, %v694_v38  ;;  %vm701_vm14 = vweird.f32 %v1009_v39 }
 0xbd5   :  { %vm702_vm1 = vmor %vm700_vm15, %vm701_vm14 }
 0xbd6   :  { %v697_v41 = vsub.f32 1.0, %v696_v40 }
 0xbd8   :  { %v698_v42 = vmul.f32 %v1009_v39, %v697_v41 }
 0xbda   :  { %v699_v45 = vadd.f32 %v1009_v39, %v698_v42 }
 0xbdc   :  { %v703_v48 = vsel %vm702_vm1, %v1009_v39, %v699_v45 }
 0xbdd   :  { %v708_v51 = vsel %vm705_vm2, %v707_v49, %v703_v48 }
 0xbde   :  { %v716_v53 = vmul.f32 %v708_v51, %v621_v22  ;;  %v725_v57 = vrot.slane %v708_v51, 2 }
 0xc34   :  { %v712_v43 = vpop.permute.xlu0 %711 }
 0xc35   :  { %v713_v44 = vrot.slane %v712_v43, 2 }
 0xc37   :  { %1010 = vtanh.f32 %v713_v44 }
 0xc3d   :  { %v1011_v50 = vpop.eup %1010 }
 0xc3e   :  { %v717_v52 = vmul.f32 %v1011_v50, %v708_v51 }
 0xc40   :  { %719 = vrot.lane.b32.xlu1 %v717_v52, %s1075_s26 }
 0xcb2   :  { %v720_v54 = vpop.permute.xlu1 %719 }
 0xcb3   :  { %v722_v55 = vadd.f32 %v720_v54, %v716_v53 }
 0xcb5   :  { %1012 = vtanh.f32 %v722_v55 }
 0xcbb   :  { %v1013_v56 = vpop.eup %1012 }
 0xcbc   :  { %728 = vrot.lane.b32.xlu2 %v1013_v56, %s1075_s26 }
 0xd16   :  { %v729_v58 = vpop.permute.xlu2 %728 }
 0xd17   :  { %v731_v0 = vmul.f32 %v729_v58, %v725_v57 }
 0xd19   :  { %944 = vst.msk [vmem:[%s1493_s2 + $0xc] sm:$0x3] %vm126_vm5, %v731_v0  ;;  %947 = vmatmul.msk.f32.vlgmr.msrb.gmra.mxu2 %vm34_vm6, %v731_v0  ;;  %948 = vmatmul.msk.f32.vlgmr.msrb.gmra.mxu3 %vm34_vm6, %v731_v0 }
 0xd1a   :  { %735 = vst [vmem:[#allocation1] ss:$4 sm:$0xff] %v731_v0 }
 0xd21   :  { %v736_v32 = vld.sshfl [vmem:[#allocation1] sm:$0xff pattern:$0x73625140] }
 0xd9c   :  { %v783_v2 = vpop.f32.mrf.mxu3  ;;  %v763_v5 = vpop.f32.mrf.mxu2 }
 0xd9d   :  { %v788_v3 = vrot.slane %v783_v2, 6 }
 0xd9f   :  { %v789_v6 = vsel %vm81_vm0, %v763_v5, %v788_v3 }
 0xda0   :  { %v791_v7 = vadd.f32 %v946_v4, %v789_v6 }
 0xda2   :  { %812 = vrot.lane.b32.xlu0 %v791_v7, %s1075_s26  ;;  %v949_v8 = vmul.f32 -1.442695, %v791_v7 }
 0xda4   :  { %1014 = vpow2.f32 %v949_v8 }
 0xdaa   :  { %131 = vrot.lane.b32.xlu0 %v1307_v29, %s1076_s30  ;;  %v1015_v9 = vpop.eup %1014 }
 0xdab   :  { %v795_v10 = vadd.f32 1.0, %v1015_v9 }
 0xdad   :  { %1016 = vrcp.f32 %v795_v10  ;;  %v807_v63 = vand.u32 2147483648, %v795_v10  ;;  %vm801_vm6 = vweird.f32 %v795_v10  ;;  %v805_v29 = vand.u32 2147483647, %v795_v10 }
 0xdaf   :  { %vm806_vm4 = vcmp.eq.f32.partialorder %v805_v29, 8.507059e+37 }
 0xdb2   :  { %434 = vrot.lane.b32.xlu0 %v1390_v59, %s1076_s30  ;;  %v808_v59 = vor.u32 1.1754944e-38, %v807_v63 }
 0xdb3   :  { %v1017_v11 = vpop.eup %1016 }
 0xdb4   :  { %v797_v12 = vmul.f32 %v1017_v11, %v795_v10  ;;  %vm802_vm0 = vweird.f32 %v1017_v11 }
 0xdb5   :  { %vm803_vm3 = vmor %vm801_vm6, %vm802_vm0 }
 0xdb6   :  { %v798_v13 = vsub.f32 1.0, %v797_v12 }
 0xdb8   :  { %v799_v14 = vmul.f32 %v1017_v11, %v798_v13 }
 0xdba   :  { %v800_v62 = vadd.f32 %v1017_v11, %v799_v14 }
 0xdbc   :  { %v804_v16 = vsel %vm803_vm3, %v1017_v11, %v800_v62 }
 0xdbd   :  { %v809_v19 = vsel %vm806_vm4, %v808_v59, %v804_v16 }
 0xdbe   :  { %v817_v22 = vmul.f32 %v809_v19, %v722_v55 }
 0xe14   :  { %v813_v15 = vpop.permute.xlu0 %812 }
 0xe15   :  { %v814_v61 = vrot.slane %v813_v15, 2 }
 0xe17   :  { %1018 = vtanh.f32 %v814_v61 }
 0xe1c   :  { %v132_v17 = vpop.permute.xlu0 %131 }
 0xe1d   :  { %v1019_v18 = vpop.eup %1018  ;;  %909 = vst.msk [vmem:[%s1494_s3 + $0xe] sm:$0x3] %vm126_vm5, %v132_v17 }
 0xe1e   :  { %v818_v20 = vmul.f32 %v1019_v18, %v809_v19 }
 0xe20   :  { %820 = vrot.lane.b32.xlu1 %v818_v20, %s1075_s26 }
 0xe24   :  { %v435_v21 = vpop.permute.xlu0 %434 }
 0xe25   :  { %927 = vst.msk [vmem:[%s1494_s3 + $0x8] sm:$0x3] %vm126_vm5, %v435_v21 }
 0xe28   :  { %232 = vrot.lane.b32.xlu1 %v1338_v60, %s1076_s30  ;;  %v826_v60 = vrot.slane %v809_v19, 2 }
 0xe30   :  { %535 = vrot.lane.b32.xlu1 %v1405_v28, %s1076_s30 }
 0xe92   :  { %v821_v23 = vpop.permute.xlu1 %820 }
 0xe93   :  { %v823_v24 = vadd.f32 %v821_v23, %v817_v22 }
 0xe95   :  { %1020 = vtanh.f32 %v823_v24 }
 0xe9a   :  { %v233_v25 = vpop.permute.xlu1 %232 }
 0xe9b   :  { %v1021_v26 = vpop.eup %1020  ;;  %915 = vst.msk [vmem:[%s1494_s3 + $0xc] sm:$0x3] %vm126_vm5, %v233_v25 }
 0xe9c   :  { %829 = vrot.lane.b32.xlu2 %v1021_v26, %s1075_s26 }
 0xea2   :  { %v536_v30 = vpop.permute.xlu1 %535 }
 0xea3   :  { %933 = vst.msk [vmem:[%s1494_s3 + $0x6] sm:$0x3] %vm126_vm5, %v536_v30 }
 0xea4   :  { %333 = vrot.lane.b32.xlu2 %v1369_v27, %s1076_s30 }
 0xef6   :  { %v830_v28 = vpop.permute.xlu2 %829 }
 0xef7   :  { %v832_v31 = vmul.f32 %v830_v28, %v826_v60 }
 0xef9   :  { %950 = vst.msk [vmem:[%s1493_s2 + $0xe] sm:$0x3] %vm126_vm5, %v832_v31  ;;  %s1077_s2 = smov 32  }
 0xefa   :  { %836 = vst [vmem:[#allocation1] ss:$4 sm:$0xff] %v832_v31 }
 0xefb   :  { %842 = vst.msk [vmem:[#allocation2] sm:$0x3] %vm126_vm5, %v832_v31 }
 0xefe   :  { %v334_v33 = vpop.permute.xlu2 %333 }
 0xeff   :  { %921 = vst.msk [vmem:[%s1494_s3 + $0xa] sm:$0x3] %vm126_vm5, %v334_v33 }
 0xf01   :  { %v837_v34 = vld.sshfl [vmem:[#allocation1] sm:$0xff pattern:$0x73625140] }
 0xf02   :  { %843 = vst [vmem:[#allocation1] ss:$4 sm:$0xff] %v832_v31 }
 0xf09   :  { %v844_v27 = vld.sshfl [vmem:[#allocation1] sm:$0xff pattern:$0x73625140] }
 0xf0a   :  { %845 = vrot.lane.b32.xlu0 %v844_v27, %s1076_s30  ;;  %851 = vst [vmem:[#allocation1] ss:$4 sm:$0xff] %v823_v24 }
 0xf11   :  { %v852_v35 = vld.sshfl [vmem:[#allocation1] sm:$0xff pattern:$0x73625140] }
 0xf12   :  { %737 = vrot.lane.b32.xlu0 %v736_v32, %s1076_s30  ;;  %853 = vrot.lane.b32.xlu1 %v852_v35, %s1075_s26  ;;  %857 = vst [vmem:[#allocation1] ss:$4 sm:$0xff] %v823_v24 }
 0xf19   :  { %v858_v36 = vld.sshfl [vmem:[#allocation1] sm:$0xff pattern:$0x73625140] }
 0xf1a   :  { %838 = vrot.lane.b32.xlu1 %v837_v34, %s1076_s30  ;;  %859 = vrot.lane.b32.xlu2 %v858_v36, %s1077_s2 }
 0xf22   :  { %636 = vrot.lane.b32.xlu2 %v1420_v1, %s1076_s30 }
 0xf74   :  { %v860_v37 = vpop.permute.xlu2 %859 }
 0xf75   :  { %863 = vst.msk [vmem:[#allocation4 + $0x2] sm:$0x3] %vm126_vm5, %v860_v37 }
 0xf7c   :  { %v846_v38 = vpop.permute.xlu0 %845  ;;  %v637_v39 = vpop.permute.xlu2 %636 }
 0xf7d   :  { %849 = vst.msk [vmem:[#allocation2 + $0x2] sm:$0x3] %vm126_vm5, %v846_v38 }
 0xf7e   :  { %939 = vst.msk [vmem:[%s1494_s3 + $0x4] sm:$0x3] %vm126_vm5, %v637_v39 }
 0xf7f   :  { %880 = dma.vmem_to_hbm [thread:$0]  %s873_s18, 64, %s875_s21, [#allocation3], %s1077_s2, %s1077_s2, %s1079_s23  }
 0xf84   :  { %v738_v40 = vpop.permute.xlu0 %737  ;;  %v854_v41 = vpop.permute.xlu1 %853 }
 0xf85   :  { %945 = vst.msk [vmem:[%s1494_s3 + $0x2] sm:$0x3] %vm126_vm5, %v738_v40 }
 0xf86   :  { %856 = vst.msk [vmem:[#allocation4] sm:$0x3] %vm126_vm5, %v854_v41 }
 0xf87   :  { %893 = dma.vmem_to_hbm [thread:$0]  %s886_s1, 64, %s888_s28, [#allocation5], %s1077_s2, %s1077_s2, %s1079_s23  }
 0xf8c   :  { %v839_v42 = vpop.permute.xlu1 %838 }
 0xf8d   :  { %841 = vst.msk [vmem:[%s1494_s3] sm:$0x3] %vm126_vm5, %v839_v42 }
 0xf8e   :  { %1070 = dma.done.wait [#allocation3], 64  }
 0xf8f   :  { %1071 = vsyncadd [#allocation3], 4294967232 }
 0xf90   :  { %1072 = dma.done.wait [#allocation5], 64  }
 0xf91   :  { %1073 = vsyncadd [#allocation5], 4294967232 }
 0xf92   :  { %906 = vsyncpa [#allocation3], 1 }
 0xf93   :  { %907 = vsyncpa [#allocation5], 1 }

</bundles_post_ra>
